<compile_context>
chip_gen: v6e
topology: v6e:2x2x1
jax: 0.10.0
libtpu: 0.0.40
codegen_flags: <defaults>
</compile_context>

<pallas_src>
import functools

import jax
import jax.numpy as jnp
from jax.experimental import pallas as pl
from jax.experimental.pallas import tpu as pltpu


# Pass p uses adjacency PASS_ADJ[p] and encoder weights PASS_W[p]:
#   h_1_pos, h_2_neg, h_2_pos, h_3_neg, h_3_pos, h_4_neg, h_4_pos
PASS_ADJ = (0, 1, 1, 2, 2, 3, 3)
PASS_W = (0, 0, 1, 1, 2, 2, 3)
NUM_PASSES = 7


# ----------------------------- Pallas kernel ------------------------------- #

def _contrarec_kernel(x_ref, arow_ref, w_ref, b_ref, wt_ref, tgt_ref,
                      h_ref, s_ref, *, num_nodes, use_bf16):
    """Fused: 4x (X@W_k), 7x row-0 GCN aggregation + ELU, SUM fusion, score head.

    Shapes (per batch tile of TB samples):
      x_ref    : (TB*num_nodes, H)   node features
      arow_ref : (7, TB, num_nodes)  per-pass row-0 GCN weights
      w_ref    : (4, H, H)           GCN weights (resident across grid steps)
      b_ref    : (4, 1, H)           GCN biases
      wt_ref   : (H, H)              W^T for the score head
      tgt_ref  : (TB, T, H)          target item embeddings
      h_ref    : (7, TB, H)          node-0 encoder outputs
      s_ref    : (TB, T)             sigmoid scores
    """
    tb16, H = x_ref.shape
    TB = tb16 // num_nodes
    mxu_dtype = jnp.bfloat16 if use_bf16 else jnp.float32

    x = x_ref[...].astype(mxu_dtype)

    # X @ W_k, hoisted: each encoder's linear map computed exactly once. (MXU)
    xw = []
    for k in range(4):
        wk = w_ref[k].astype(mxu_dtype)
        xw_k = jnp.dot(x, wk, preferred_element_type=jnp.float32)   # (TB*nn, H) f32
        xw.append(xw_k.reshape(TB, num_nodes, H))

    # 7 encoder passes: only node 0 of each sample is needed ->
    #   h[b] = sum_n arow[b, n] * XW_k[b, n, :] + bias_k   (VPU mul + sublane reduce)
    hs = []
    for p in range(NUM_PASSES):
        k = PASS_W[p]
        a = arow_ref[p]                                   # (TB, num_nodes)
        agg = jnp.sum(a[:, :, None] * xw[k], axis=1)      # (TB, H)
        y = agg + b_ref[k]                                # (TB, H) + (1, H)
        # ELU(alpha=1) with guarded exp (no inf intermediates for large positives).
        h = jnp.where(y > 0.0, y, jnp.exp(jnp.minimum(y, 0.0)) - 1.0)
        h_ref[p] = h
        hs.append(h)

    # fusion == 'SUM' over the *_pos outputs.
    h_concat = hs[0] + hs[2] + hs[4] + hs[6]              # (TB, H)

    # Reassociated score: Wh = h_concat @ W^T  (one small MXU matmul),
    # then s[b,t] = sum_h targets[b,t,h] * Wh[b,h]  (lane reduce).
    Wh = jnp.dot(h_concat.astype(mxu_dtype), wt_ref[...].astype(mxu_dtype),
                 preferred_element_type=jnp.float32)      # (TB, H)
    s = jnp.sum(tgt_ref[...] * Wh[:, None, :], axis=-1)   # (TB, T)
    s_ref[...] = 1.0 / (1.0 + jnp.exp(-s))                # sigmoid
    # TODO(synk): for large T, pad the score output to a 128-lane-dense slab to
    #             avoid masked partial stores (negligible at T=8).


def _pick_batch_tile(B):
    for tb in (256, 128, 64, 32, 16, 8):
        if B % tb == 0:
            return tb
    return B


def contrarec_fused(x_emb, arow_pass, gcn_w, gcn_b, w_t, targets_emb, *,
                    num_nodes, use_bf16=False):
    """One pallas_call covering all 7 encoder passes, SUM fusion and the score head."""
    N, H = x_emb.shape
    B = N // num_nodes
    P = arow_pass.shape[0]
    T = targets_emb.shape[1]
    TB = _pick_batch_tile(B)
    grid = (B // TB,)

    kernel = functools.partial(_contrarec_kernel, num_nodes=num_nodes,
                               use_bf16=use_bf16)

    h_all, scores = pl.pallas_call(
        kernel,
        out_shape=(jax.ShapeDtypeStruct((P, B, H), jnp.float32),
                   jax.ShapeDtypeStruct((B, T), jnp.float32)),
        grid=grid,
        in_specs=[
            pl.BlockSpec((TB * num_nodes, H), lambda i: (i, 0)),
            pl.BlockSpec((P, TB, num_nodes), lambda i: (0, i, 0)),
            pl.BlockSpec((4, H, H), lambda i: (0, 0, 0)),   # weights stay resident
            pl.BlockSpec((4, 1, H), lambda i: (0, 0, 0)),
            pl.BlockSpec((H, H), lambda i: (0, 0)),
            pl.BlockSpec((TB, T, H), lambda i: (i, 0, 0)),
        ],
        out_specs=(
            pl.BlockSpec((P, TB, H), lambda i: (0, i, 0)),
            pl.BlockSpec((TB, T), lambda i: (i, 0)),
        ),
        compiler_params=pltpu.CompilerParams(
            dimension_semantics=("parallel",),          # shard batch tiles across TCs
            vmem_limit_bytes=32 * 1024 * 1024,          # safe on v7x's 64 MiB VMEM
        ),
    )(x_emb, arow_pass, gcn_w, gcn_b, w_t, targets_emb)
    return h_all, scores


# ------------------------------ JAX glue ----------------------------------- #

def gcn_row0_weights(edge_index, B, num_nodes):
    """Row-0 (user node) row of the GCN-normalized batched adjacency, per sample.

    PyG gcn_norm with add_self_loops=False, restricted to the rows that are
    actually consumed (node 0 of every sample). Returns (B, num_nodes) with
    out[b, n] = sum over edges (src = b*nn + n -> dst = b*nn + 0) of
    deg^{-1/2}[src] * deg^{-1/2}[dst].

    NOTE: assumes PyG-style batching where every edge stays inside its sample's
    node block (src // num_nodes == dst // num_nodes) and the edge list is
    symmetric (as GCNConv normalization expects).
    """
    src, dst = edge_index[0], edge_index[1]
    N = B * num_nodes
    w = jnp.ones(src.shape[0], jnp.float32)
    deg = jnp.zeros(N, jnp.float32).at[dst].add(w)
    dinv = jnp.where(deg > 0, 1.0 / jnp.sqrt(deg), 0.0)
    norm = dinv[src] * dinv[dst]
    val = jnp.where((dst % num_nodes) == 0, norm, 0.0)   # only node-0 rows contribute
    b_idx = dst // num_nodes
    n_idx = src % num_nodes
    return jnp.zeros((B, num_nodes), jnp.float32).at[b_idx, n_idx].add(val)


def _gather_inputs(params, x, y, cfg):
    num_nodes = cfg["num_nodes"]
    H = cfg["hidden_dim"]
    mb, mi, mc = (cfg["max_behaviors_length"], cfg["max_items_length"],
                  cfg["max_cats_length"])
    T = cfg["max_num_buy"] * (1 + cfg["train_negative_samples"])

    x = x.reshape(-1, num_nodes)
    y = y.reshape(-1, 6, T)
    B = x.shape[0]

    users_index = x[:, 0:1]
    behaviors_index = x[:, 1:mb + 1]
    items_index = x[:, mb + 1:mi + mb + 1]
    cats_index = x[:, -mc:]

    users_emb = jnp.take(params["users_tbl"], users_index, axis=0)
    behaviors_emb = jnp.take(params["behaviors_tbl"], behaviors_index, axis=0)
    items_emb = jnp.take(params["items_tbl"], items_index, axis=0)
    cats_emb = jnp.take(params["cats_tbl"], cats_index, axis=0)

    # mode == 'train'
    targets_emb = jnp.take(params["items_tbl"], y[:, 0, :], axis=0)      # (B, T, H)

    x_emb = jnp.concatenate([users_emb, behaviors_emb, items_emb, cats_emb], axis=1)
    x_emb = x_emb.reshape(B * num_nodes, H)
    return x_emb, targets_emb, B


def contrarec_forward(params, x, y, edge_indices, cfg, use_bf16=False):
    num_nodes = cfg["num_nodes"]
    x_emb, targets_emb, B = _gather_inputs(params, x, y, cfg)

    # Block-diagonal structure exploited: only (B, num_nodes) row-0 weights per graph.
    arow_adj = [gcn_row0_weights(e, B, num_nodes) for e in edge_indices]
    arow_pass = jnp.stack([arow_adj[a] for a in PASS_ADJ])               # (7, B, nn)

    h_all, scores = contrarec_fused(
        x_emb, arow_pass, params["gcn_w"], params["gcn_b"], params["W"].T,
        targets_emb, num_nodes=num_nodes, use_bf16=use_bf16)

    h_1_pos, h_2_neg, h_2_pos, h_3_neg, h_3_pos, h_4_neg, h_4_pos = (
        h_all[0], h_all[1], h_all[2], h_all[3], h_all[4], h_all[5], h_all[6])
    return scores, h_1_pos, h_2_neg, h_2_pos, h_3_neg, h_3_pos, h_4_neg, h_4_pos


# ------------------------ pure-JAX reference (dense) ------------------------ #

def reference_forward(params, x, y, edge_indices, cfg):
    """Dense, un-optimized reference mirroring the torch module (for correctness)."""
    num_nodes = cfg["num_nodes"]
    H = cfg["hidden_dim"]
    x_emb, targets_emb, B = _gather_inputs(params, x, y, cfg)
    N = B * num_nodes
    hi = jax.lax.Precision.HIGHEST

    def dense_adj(e):
        src, dst = e[0], e[1]
        w = jnp.ones(src.shape[0], jnp.float32)
        deg = jnp.zeros(N, jnp.float32).at[dst].add(w)
        dinv = jnp.where(deg > 0, 1.0 / jnp.sqrt(deg), 0.0)
        norm = dinv[src] * dinv[dst]
        return jnp.zeros((N, N), jnp.float32).at[dst, src].add(norm)

    adjs = [dense_adj(e) for e in edge_indices]

    def enc(k, A):
        xw = jnp.dot(x_emb, params["gcn_w"][k], precision=hi)
        yv = jnp.dot(A, xw, precision=hi) + params["gcn_b"][k]
        h = jnp.where(yv > 0.0, yv, jnp.exp(jnp.minimum(yv, 0.0)) - 1.0)
        return h.reshape(B, num_nodes, H)[:, 0, :]

    h1p = enc(0, adjs[0]); h2n = enc(0, adjs[1]); h2p = enc(1, adjs[1])
    h3n = enc(1, adjs[2]); h3p = enc(2, adjs[2]); h4n = enc(2, adjs[3])
    h4p = enc(3, adjs[3])
    h_concat = h1p + h2p + h3p + h4p

    latent = jnp.einsum("bth,hj->btj", targets_emb, params["W"], precision=hi)
    s = jnp.einsum("btj,bj->bt", latent, h_concat, precision=hi)
    scores = jax.nn.sigmoid(s)
    return scores, h1p, h2n, h2p, h3n, h3p, h4n, h4p


# ----------------------- deterministic parameter init ---------------------- #

def init_params(key, cfg):
    H = cfg["hidden_dim"]
    ks = jax.random.split(key, 16)

    def emb(k, n):
        t = jax.random.normal(k, (n, H), jnp.float32) * 0.05
        return t.at[0].set(0.0)          # padding_idx=0

    gcn_w = jnp.stack([jax.random.normal(ks[4 + i], (H, H), jnp.float32)
                       / jnp.sqrt(float(H)) for i in range(4)])
    return {
        "users_tbl": emb(ks[0], cfg["users_num"] + 1),
        "behaviors_tbl": emb(ks[1], 4 + 1),
        "items_tbl": emb(ks[2], cfg["items_num"] + 1),
        "cats_tbl": emb(ks[3], cfg["cats_num"] + 1),
        "gcn_w": gcn_w,                                   # (4, H, H)
        "gcn_b": jnp.zeros((4, 1, H), jnp.float32),       # (4, 1, H)
        # xavier_normal_(gain=1): std = sqrt(2/(H+H)) = 1/sqrt(H)
        "W": jax.random.normal(ks[8], (H, H), jnp.float32) / jnp.sqrt(float(H)),
    }


def make_edges(key, B, num_nodes, edges_per_graph):
    """Random undirected edges inside each sample's node block (PyG-style batched graph)."""
    srcs, dsts = [], []
    ks = jax.random.split(key, B)
    for b in range(B):
        k1, k2 = jax.random.split(ks[b])
        s = jax.random.randint(k1, (edges_per_graph,), 0, num_nodes)
        d = jax.random.randint(k2, (edges_per_graph,), 0, num_nodes)
        off = b * num_nodes
        srcs += [s + off, d + off]
        dsts += [d + off, s + off]
    return jnp.stack([jnp.concatenate(srcs), jnp.concatenate(dsts)]).astype(jnp.int32)


# ---------------------------------- main ------------------------------------ #

if __name__ == "__main__":
    cfg = dict(
        num_nodes=16,                 # 1 user + 5 behaviors + 5 items + 5 cats
        users_num=10, items_num=20, cats_num=6,
        hidden_dim=128,
        max_num_buy=2, train_negative_samples=3,
        max_behaviors_length=5, max_items_length=5, max_cats_length=5,
    )
    B = 2
    T = cfg["max_num_buy"] * (1 + cfg["train_negative_samples"])

    key = jax.random.PRNGKey(0)
    kp, kx, ky, ke = jax.random.split(key, 4)
    params = init_params(kp, cfg)

    k1, k2, k3, k4 = jax.random.split(kx, 4)
    users = jax.random.randint(k1, (B, 1), 1, cfg["users_num"] + 1)
    behs = jax.random.randint(k2, (B, cfg["max_behaviors_length"]), 1, 5)
    items = jax.random.randint(k3, (B, cfg["max_items_length"]), 1, cfg["items_num"] + 1)
    cats = jax.random.randint(k4, (B, cfg["max_cats_length"]), 1, cfg["cats_num"] + 1)
    x = jnp.concatenate([users, behs, items, cats], axis=1).astype(jnp.int32)   # (B, 16)
    y = jax.random.randint(ky, (B, 6, T), 1, cfg["items_num"] + 1).astype(jnp.int32)

    ek = jax.random.split(ke, 4)
    edges = tuple(make_edges(ek[i], B, cfg["num_nodes"], 24) for i in range(4))

    # f32 path (matches torch semantics) + correctness check vs dense JAX reference.
    outs = jax.block_until_ready(contrarec_forward(params, x, y, edges, cfg,
                                                   use_bf16=False))
    ref = jax.block_until_ready(reference_forward(params, x, y, edges, cfg))

    scores = outs[0]
    assert scores.shape == (B, T)
    assert all(h.shape == (B, cfg["hidden_dim"]) for h in outs[1:])
    for o, r in zip(outs, ref):
        assert o.shape == r.shape
        assert bool(jnp.allclose(o, r, rtol=1e-3, atol=1e-4)), "mismatch vs reference"
    assert bool(jnp.all(jnp.isfinite(scores)))

    # bf16 MXU-operand / f32-accumulate variant (v5e/v6e perf feedback): runs & finite.
    outs_bf16 = jax.block_until_ready(contrarec_forward(params, x, y, edges, cfg,
                                                        use_bf16=True))
    assert outs_bf16[0].shape == (B, T)
    assert bool(jnp.all(jnp.isfinite(outs_bf16[0])))

    # TODO(synk): other graph_encoder variants (GAT/TAG/AGNN/GIN/SG/APPNP) and the
    #             MLP/PNLF fusion branches are not exercised by this configuration.
    print("KERNEL_OK")
</pallas_src>

<mosaic_0001>
module attributes {stable_mosaic.version = 11 : i64} {
  func.func @_contrarec_kernel(%arg0: i32, %arg1: memref<32x128xf32, #tpu.memory_space<vmem>>, %arg2: memref<7x2x16xf32, #tpu.memory_space<vmem>>, %arg3: memref<4x128x128xf32, #tpu.memory_space<vmem>>, %arg4: memref<4x1x128xf32, #tpu.memory_space<vmem>>, %arg5: memref<128x128xf32, #tpu.memory_space<vmem>>, %arg6: memref<2x8x128xf32, #tpu.memory_space<vmem>>, %arg7: memref<7x2x128xf32, #tpu.memory_space<vmem>>, %arg8: memref<2x8xf32, #tpu.memory_space<vmem>>) attributes {dimension_semantics = [#tpu.dimension_semantics<parallel>], iteration_bounds = array<i64: 1>, scalar_prefetch = 0 : i64, scratch_operands = 0 : i64, tpu.core_type = #tpu.core_type<tc>, window_params = [{transform_indices = @transform_0, window_bounds = array<i64: 32, 128>}, {transform_indices = @transform_1, window_bounds = array<i64: 7, 2, 16>}, {pipeline_mode = #tpu.pipeline_mode<synchronous>, transform_indices = @transform_2, window_bounds = array<i64: 4, 128, 128>}, {pipeline_mode = #tpu.pipeline_mode<synchronous>, transform_indices = @transform_3, window_bounds = array<i64: 4, 1, 128>}, {pipeline_mode = #tpu.pipeline_mode<synchronous>, transform_indices = @transform_4, window_bounds = array<i64: 128, 128>}, {transform_indices = @transform_5, window_bounds = array<i64: 2, 8, 128>}, {transform_indices = @transform_6, window_bounds = array<i64: 7, 2, 128>}, {transform_indices = @transform_7, window_bounds = array<i64: 2, 8>}]} {
    %c0 = arith.constant 0 : index
    %c0_0 = arith.constant 0 : index
    %0 = vector.load %arg1[%c0, %c0_0] : memref<32x128xf32, #tpu.memory_space<vmem>>, vector<32x128xf32>
    %c0_1 = arith.constant 0 : index
    %c0_2 = arith.constant 0 : index
    %c0_3 = arith.constant 0 : index
    %1 = vector.load %arg3[%c0_1, %c0_2, %c0_3] : memref<4x128x128xf32, #tpu.memory_space<vmem>>, vector<1x128x128xf32>
    %2 = vector.shape_cast %1 : vector<1x128x128xf32> to vector<128x128xf32>
    %cst = arith.constant dense<0.000000e+00> : vector<32x128xf32>
    %3 = tpu.matmul %0, %2, %cst {dimension_numbers = #tpu.dot_dimension_numbers<[1], [0], [0], [1], [0, 0, 1, 1], [], []>} : vector<32x128xf32>, vector<128x128xf32>, vector<32x128xf32> -> vector<32x128xf32>
    %4 = vector.shape_cast %3 : vector<32x128xf32> to vector<2x16x128xf32>
    %c1 = arith.constant 1 : index
    %c0_4 = arith.constant 0 : index
    %c0_5 = arith.constant 0 : index
    %5 = vector.load %arg3[%c1, %c0_4, %c0_5] : memref<4x128x128xf32, #tpu.memory_space<vmem>>, vector<1x128x128xf32>
    %6 = vector.shape_cast %5 : vector<1x128x128xf32> to vector<128x128xf32>
    %cst_6 = arith.constant dense<0.000000e+00> : vector<32x128xf32>
    %7 = tpu.matmul %0, %6, %cst_6 {dimension_numbers = #tpu.dot_dimension_numbers<[1], [0], [0], [1], [0, 0, 1, 1], [], []>} : vector<32x128xf32>, vector<128x128xf32>, vector<32x128xf32> -> vector<32x128xf32>
    %8 = vector.shape_cast %7 : vector<32x128xf32> to vector<2x16x128xf32>
    %c2 = arith.constant 2 : index
    %c0_7 = arith.constant 0 : index
    %c0_8 = arith.constant 0 : index
    %9 = vector.load %arg3[%c2, %c0_7, %c0_8] : memref<4x128x128xf32, #tpu.memory_space<vmem>>, vector<1x128x128xf32>
    %10 = vector.shape_cast %9 : vector<1x128x128xf32> to vector<128x128xf32>
    %cst_9 = arith.constant dense<0.000000e+00> : vector<32x128xf32>
    %11 = tpu.matmul %0, %10, %cst_9 {dimension_numbers = #tpu.dot_dimension_numbers<[1], [0], [0], [1], [0, 0, 1, 1], [], []>} : vector<32x128xf32>, vector<128x128xf32>, vector<32x128xf32> -> vector<32x128xf32>
    %12 = vector.shape_cast %11 : vector<32x128xf32> to vector<2x16x128xf32>
    %c3 = arith.constant 3 : index
    %c0_10 = arith.constant 0 : index
    %c0_11 = arith.constant 0 : index
    %13 = vector.load %arg3[%c3, %c0_10, %c0_11] : memref<4x128x128xf32, #tpu.memory_space<vmem>>, vector<1x128x128xf32>
    %14 = vector.shape_cast %13 : vector<1x128x128xf32> to vector<128x128xf32>
    %cst_12 = arith.constant dense<0.000000e+00> : vector<32x128xf32>
    %15 = tpu.matmul %0, %14, %cst_12 {dimension_numbers = #tpu.dot_dimension_numbers<[1], [0], [0], [1], [0, 0, 1, 1], [], []>} : vector<32x128xf32>, vector<128x128xf32>, vector<32x128xf32> -> vector<32x128xf32>
    %16 = vector.shape_cast %15 : vector<32x128xf32> to vector<2x16x128xf32>
    %c0_13 = arith.constant 0 : index
    %c0_14 = arith.constant 0 : index
    %c0_15 = arith.constant 0 : index
    %17 = vector.load %arg2[%c0_13, %c0_14, %c0_15] : memref<7x2x16xf32, #tpu.memory_space<vmem>>, vector<1x2x16xf32>
    %18 = vector.shape_cast %17 : vector<1x2x16xf32> to vector<2x16xf32>
    %19 = vector.shape_cast %18 : vector<2x16xf32> to vector<2x16x1xf32>
    %20 = vector.broadcast %19 : vector<2x16x1xf32> to vector<2x16x128xf32>
    %21 = arith.mulf %20, %4 : vector<2x16x128xf32>
    %cst_16 = arith.constant dense<0.000000e+00> : vector<2x128xf32>
    %22 = vector.multi_reduction <add>, %21, %cst_16 [1] : vector<2x16x128xf32> to vector<2x128xf32>
    %c0_17 = arith.constant 0 : index
    %c0_18 = arith.constant 0 : index
    %c0_19 = arith.constant 0 : index
    %23 = vector.load %arg4[%c0_17, %c0_18, %c0_19] : memref<4x1x128xf32, #tpu.memory_space<vmem>>, vector<1x1x128xf32>
    %24 = vector.shape_cast %23 : vector<1x1x128xf32> to vector<1x128xf32>
    %25 = vector.broadcast %24 : vector<1x128xf32> to vector<2x128xf32>
    %26 = arith.addf %22, %25 : vector<2x128xf32>
    %cst_20 = arith.constant 0.000000e+00 : f32
    %27 = vector.broadcast %cst_20 : f32 to vector<2x128xf32>
    %28 = arith.cmpf ogt, %26, %27 : vector<2x128xf32>
    %cst_21 = arith.constant 0.000000e+00 : f32
    %29 = vector.broadcast %cst_21 : f32 to vector<2x128xf32>
    %30 = arith.minimumf %26, %29 : vector<2x128xf32>
    %31 = math.exp %30 : vector<2x128xf32>
    %cst_22 = arith.constant 1.000000e+00 : f32
    %32 = vector.broadcast %cst_22 : f32 to vector<2x128xf32>
    %33 = arith.subf %31, %32 : vector<2x128xf32>
    %34 = arith.select %28, %26, %33 : vector<2x128xi1>, vector<2x128xf32>
    %c0_23 = arith.constant 0 : index
    %c0_24 = arith.constant 0 : index
    %c0_25 = arith.constant 0 : index
    %35 = vector.load %arg7[%c0_23, %c0_24, %c0_25] : memref<7x2x128xf32, #tpu.memory_space<vmem>>, vector<1x2x128xf32>
    %36 = vector.shape_cast %35 : vector<1x2x128xf32> to vector<2x128xf32>
    %37 = vector.shape_cast %34 : vector<2x128xf32> to vector<1x2x128xf32>
    tpu.vector_store %arg7[%c0_23, %c0_24, %c0_25], %37 {strides = array<i32>} : memref<7x2x128xf32, #tpu.memory_space<vmem>>, vector<1x2x128xf32>,
    %c1_26 = arith.constant 1 : index
    %c0_27 = arith.constant 0 : index
    %c0_28 = arith.constant 0 : index
    %38 = vector.load %arg2[%c1_26, %c0_27, %c0_28] : memref<7x2x16xf32, #tpu.memory_space<vmem>>, vector<1x2x16xf32>
    %39 = vector.shape_cast %38 : vector<1x2x16xf32> to vector<2x16xf32>
    %40 = vector.shape_cast %39 : vector<2x16xf32> to vector<2x16x1xf32>
    %41 = vector.broadcast %40 : vector<2x16x1xf32> to vector<2x16x128xf32>
    %42 = arith.mulf %41, %4 : vector<2x16x128xf32>
    %cst_29 = arith.constant dense<0.000000e+00> : vector<2x128xf32>
    %43 = vector.multi_reduction <add>, %42, %cst_29 [1] : vector<2x16x128xf32> to vector<2x128xf32>
    %c0_30 = arith.constant 0 : index
    %c0_31 = arith.constant 0 : index
    %c0_32 = arith.constant 0 : index
    %44 = vector.load %arg4[%c0_30, %c0_31, %c0_32] : memref<4x1x128xf32, #tpu.memory_space<vmem>>, vector<1x1x128xf32>
    %45 = vector.shape_cast %44 : vector<1x1x128xf32> to vector<1x128xf32>
    %46 = vector.broadcast %45 : vector<1x128xf32> to vector<2x128xf32>
    %47 = arith.addf %43, %46 : vector<2x128xf32>
    %cst_33 = arith.constant 0.000000e+00 : f32
    %48 = vector.broadcast %cst_33 : f32 to vector<2x128xf32>
    %49 = arith.cmpf ogt, %47, %48 : vector<2x128xf32>
    %cst_34 = arith.constant 0.000000e+00 : f32
    %50 = vector.broadcast %cst_34 : f32 to vector<2x128xf32>
    %51 = arith.minimumf %47, %50 : vector<2x128xf32>
    %52 = math.exp %51 : vector<2x128xf32>
    %cst_35 = arith.constant 1.000000e+00 : f32
    %53 = vector.broadcast %cst_35 : f32 to vector<2x128xf32>
    %54 = arith.subf %52, %53 : vector<2x128xf32>
    %55 = arith.select %49, %47, %54 : vector<2x128xi1>, vector<2x128xf32>
    %c1_36 = arith.constant 1 : index
    %c0_37 = arith.constant 0 : index
    %c0_38 = arith.constant 0 : index
    %56 = vector.load %arg7[%c1_36, %c0_37, %c0_38] : memref<7x2x128xf32, #tpu.memory_space<vmem>>, vector<1x2x128xf32>
    %57 = vector.shape_cast %56 : vector<1x2x128xf32> to vector<2x128xf32>
    %58 = vector.shape_cast %55 : vector<2x128xf32> to vector<1x2x128xf32>
    tpu.vector_store %arg7[%c1_36, %c0_37, %c0_38], %58 {strides = array<i32>} : memref<7x2x128xf32, #tpu.memory_space<vmem>>, vector<1x2x128xf32>,
    %c2_39 = arith.constant 2 : index
    %c0_40 = arith.constant 0 : index
    %c0_41 = arith.constant 0 : index
    %59 = vector.load %arg2[%c2_39, %c0_40, %c0_41] : memref<7x2x16xf32, #tpu.memory_space<vmem>>, vector<1x2x16xf32>
    %60 = vector.shape_cast %59 : vector<1x2x16xf32> to vector<2x16xf32>
    %61 = vector.shape_cast %60 : vector<2x16xf32> to vector<2x16x1xf32>
    %62 = vector.broadcast %61 : vector<2x16x1xf32> to vector<2x16x128xf32>
    %63 = arith.mulf %62, %8 : vector<2x16x128xf32>
    %cst_42 = arith.constant dense<0.000000e+00> : vector<2x128xf32>
    %64 = vector.multi_reduction <add>, %63, %cst_42 [1] : vector<2x16x128xf32> to vector<2x128xf32>
    %c1_43 = arith.constant 1 : index
    %c0_44 = arith.constant 0 : index
    %c0_45 = arith.constant 0 : index
    %65 = vector.load %arg4[%c1_43, %c0_44, %c0_45] : memref<4x1x128xf32, #tpu.memory_space<vmem>>, vector<1x1x128xf32>
    %66 = vector.shape_cast %65 : vector<1x1x128xf32> to vector<1x128xf32>
    %67 = vector.broadcast %66 : vector<1x128xf32> to vector<2x128xf32>
    %68 = arith.addf %64, %67 : vector<2x128xf32>
    %cst_46 = arith.constant 0.000000e+00 : f32
    %69 = vector.broadcast %cst_46 : f32 to vector<2x128xf32>
    %70 = arith.cmpf ogt, %68, %69 : vector<2x128xf32>
    %cst_47 = arith.constant 0.000000e+00 : f32
    %71 = vector.broadcast %cst_47 : f32 to vector<2x128xf32>
    %72 = arith.minimumf %68, %71 : vector<2x128xf32>
    %73 = math.exp %72 : vector<2x128xf32>
    %cst_48 = arith.constant 1.000000e+00 : f32
    %74 = vector.broadcast %cst_48 : f32 to vector<2x128xf32>
    %75 = arith.subf %73, %74 : vector<2x128xf32>
    %76 = arith.select %70, %68, %75 : vector<2x128xi1>, vector<2x128xf32>
    %c2_49 = arith.constant 2 : index
    %c0_50 = arith.constant 0 : index
    %c0_51 = arith.constant 0 : index
    %77 = vector.load %arg7[%c2_49, %c0_50, %c0_51] : memref<7x2x128xf32, #tpu.memory_space<vmem>>, vector<1x2x128xf32>
    %78 = vector.shape_cast %77 : vector<1x2x128xf32> to vector<2x128xf32>
    %79 = vector.shape_cast %76 : vector<2x128xf32> to vector<1x2x128xf32>
    tpu.vector_store %arg7[%c2_49, %c0_50, %c0_51], %79 {strides = array<i32>} : memref<7x2x128xf32, #tpu.memory_space<vmem>>, vector<1x2x128xf32>,
    %c3_52 = arith.constant 3 : index
    %c0_53 = arith.constant 0 : index
    %c0_54 = arith.constant 0 : index
    %80 = vector.load %arg2[%c3_52, %c0_53, %c0_54] : memref<7x2x16xf32, #tpu.memory_space<vmem>>, vector<1x2x16xf32>
    %81 = vector.shape_cast %80 : vector<1x2x16xf32> to vector<2x16xf32>
    %82 = vector.shape_cast %81 : vector<2x16xf32> to vector<2x16x1xf32>
    %83 = vector.broadcast %82 : vector<2x16x1xf32> to vector<2x16x128xf32>
    %84 = arith.mulf %83, %8 : vector<2x16x128xf32>
    %cst_55 = arith.constant dense<0.000000e+00> : vector<2x128xf32>
    %85 = vector.multi_reduction <add>, %84, %cst_55 [1] : vector<2x16x128xf32> to vector<2x128xf32>
    %c1_56 = arith.constant 1 : index
    %c0_57 = arith.constant 0 : index
    %c0_58 = arith.constant 0 : index
    %86 = vector.load %arg4[%c1_56, %c0_57, %c0_58] : memref<4x1x128xf32, #tpu.memory_space<vmem>>, vector<1x1x128xf32>
    %87 = vector.shape_cast %86 : vector<1x1x128xf32> to vector<1x128xf32>
    %88 = vector.broadcast %87 : vector<1x128xf32> to vector<2x128xf32>
    %89 = arith.addf %85, %88 : vector<2x128xf32>
    %cst_59 = arith.constant 0.000000e+00 : f32
    %90 = vector.broadcast %cst_59 : f32 to vector<2x128xf32>
    %91 = arith.cmpf ogt, %89, %90 : vector<2x128xf32>
    %cst_60 = arith.constant 0.000000e+00 : f32
    %92 = vector.broadcast %cst_60 : f32 to vector<2x128xf32>
    %93 = arith.minimumf %89, %92 : vector<2x128xf32>
    %94 = math.exp %93 : vector<2x128xf32>
    %cst_61 = arith.constant 1.000000e+00 : f32
    %95 = vector.broadcast %cst_61 : f32 to vector<2x128xf32>
    %96 = arith.subf %94, %95 : vector<2x128xf32>
    %97 = arith.select %91, %89, %96 : vector<2x128xi1>, vector<2x128xf32>
    %c3_62 = arith.constant 3 : index
    %c0_63 = arith.constant 0 : index
    %c0_64 = arith.constant 0 : index
    %98 = vector.load %arg7[%c3_62, %c0_63, %c0_64] : memref<7x2x128xf32, #tpu.memory_space<vmem>>, vector<1x2x128xf32>
    %99 = vector.shape_cast %98 : vector<1x2x128xf32> to vector<2x128xf32>
    %100 = vector.shape_cast %97 : vector<2x128xf32> to vector<1x2x128xf32>
    tpu.vector_store %arg7[%c3_62, %c0_63, %c0_64], %100 {strides = array<i32>} : memref<7x2x128xf32, #tpu.memory_space<vmem>>, vector<1x2x128xf32>,
    %c4 = arith.constant 4 : index
    %c0_65 = arith.constant 0 : index
    %c0_66 = arith.constant 0 : index
    %101 = vector.load %arg2[%c4, %c0_65, %c0_66] : memref<7x2x16xf32, #tpu.memory_space<vmem>>, vector<1x2x16xf32>
    %102 = vector.shape_cast %101 : vector<1x2x16xf32> to vector<2x16xf32>
    %103 = vector.shape_cast %102 : vector<2x16xf32> to vector<2x16x1xf32>
    %104 = vector.broadcast %103 : vector<2x16x1xf32> to vector<2x16x128xf32>
    %105 = arith.mulf %104, %12 : vector<2x16x128xf32>
    %cst_67 = arith.constant dense<0.000000e+00> : vector<2x128xf32>
    %106 = vector.multi_reduction <add>, %105, %cst_67 [1] : vector<2x16x128xf32> to vector<2x128xf32>
    %c2_68 = arith.constant 2 : index
    %c0_69 = arith.constant 0 : index
    %c0_70 = arith.constant 0 : index
    %107 = vector.load %arg4[%c2_68, %c0_69, %c0_70] : memref<4x1x128xf32, #tpu.memory_space<vmem>>, vector<1x1x128xf32>
    %108 = vector.shape_cast %107 : vector<1x1x128xf32> to vector<1x128xf32>
    %109 = vector.broadcast %108 : vector<1x128xf32> to vector<2x128xf32>
    %110 = arith.addf %106, %109 : vector<2x128xf32>
    %cst_71 = arith.constant 0.000000e+00 : f32
    %111 = vector.broadcast %cst_71 : f32 to vector<2x128xf32>
    %112 = arith.cmpf ogt, %110, %111 : vector<2x128xf32>
    %cst_72 = arith.constant 0.000000e+00 : f32
    %113 = vector.broadcast %cst_72 : f32 to vector<2x128xf32>
    %114 = arith.minimumf %110, %113 : vector<2x128xf32>
    %115 = math.exp %114 : vector<2x128xf32>
    %cst_73 = arith.constant 1.000000e+00 : f32
    %116 = vector.broadcast %cst_73 : f32 to vector<2x128xf32>
    %117 = arith.subf %115, %116 : vector<2x128xf32>
    %118 = arith.select %112, %110, %117 : vector<2x128xi1>, vector<2x128xf32>
    %c4_74 = arith.constant 4 : index
    %c0_75 = arith.constant 0 : index
    %c0_76 = arith.constant 0 : index
    %119 = vector.load %arg7[%c4_74, %c0_75, %c0_76] : memref<7x2x128xf32, #tpu.memory_space<vmem>>, vector<1x2x128xf32>
    %120 = vector.shape_cast %119 : vector<1x2x128xf32> to vector<2x128xf32>
    %121 = vector.shape_cast %118 : vector<2x128xf32> to vector<1x2x128xf32>
    tpu.vector_store %arg7[%c4_74, %c0_75, %c0_76], %121 {strides = array<i32>} : memref<7x2x128xf32, #tpu.memory_space<vmem>>, vector<1x2x128xf32>,
    %c5 = arith.constant 5 : index
    %c0_77 = arith.constant 0 : index
    %c0_78 = arith.constant 0 : index
    %122 = vector.load %arg2[%c5, %c0_77, %c0_78] : memref<7x2x16xf32, #tpu.memory_space<vmem>>, vector<1x2x16xf32>
    %123 = vector.shape_cast %122 : vector<1x2x16xf32> to vector<2x16xf32>
    %124 = vector.shape_cast %123 : vector<2x16xf32> to vector<2x16x1xf32>
    %125 = vector.broadcast %124 : vector<2x16x1xf32> to vector<2x16x128xf32>
    %126 = arith.mulf %125, %12 : vector<2x16x128xf32>
    %cst_79 = arith.constant dense<0.000000e+00> : vector<2x128xf32>
    %127 = vector.multi_reduction <add>, %126, %cst_79 [1] : vector<2x16x128xf32> to vector<2x128xf32>
    %c2_80 = arith.constant 2 : index
    %c0_81 = arith.constant 0 : index
    %c0_82 = arith.constant 0 : index
    %128 = vector.load %arg4[%c2_80, %c0_81, %c0_82] : memref<4x1x128xf32, #tpu.memory_space<vmem>>, vector<1x1x128xf32>
    %129 = vector.shape_cast %128 : vector<1x1x128xf32> to vector<1x128xf32>
    %130 = vector.broadcast %129 : vector<1x128xf32> to vector<2x128xf32>
    %131 = arith.addf %127, %130 : vector<2x128xf32>
    %cst_83 = arith.constant 0.000000e+00 : f32
    %132 = vector.broadcast %cst_83 : f32 to vector<2x128xf32>
    %133 = arith.cmpf ogt, %131, %132 : vector<2x128xf32>
    %cst_84 = arith.constant 0.000000e+00 : f32
    %134 = vector.broadcast %cst_84 : f32 to vector<2x128xf32>
    %135 = arith.minimumf %131, %134 : vector<2x128xf32>
    %136 = math.exp %135 : vector<2x128xf32>
    %cst_85 = arith.constant 1.000000e+00 : f32
    %137 = vector.broadcast %cst_85 : f32 to vector<2x128xf32>
    %138 = arith.subf %136, %137 : vector<2x128xf32>
    %139 = arith.select %133, %131, %138 : vector<2x128xi1>, vector<2x128xf32>
    %c5_86 = arith.constant 5 : index
    %c0_87 = arith.constant 0 : index
    %c0_88 = arith.constant 0 : index
    %140 = vector.load %arg7[%c5_86, %c0_87, %c0_88] : memref<7x2x128xf32, #tpu.memory_space<vmem>>, vector<1x2x128xf32>
    %141 = vector.shape_cast %140 : vector<1x2x128xf32> to vector<2x128xf32>
    %142 = vector.shape_cast %139 : vector<2x128xf32> to vector<1x2x128xf32>
    tpu.vector_store %arg7[%c5_86, %c0_87, %c0_88], %142 {strides = array<i32>} : memref<7x2x128xf32, #tpu.memory_space<vmem>>, vector<1x2x128xf32>,
    %c6 = arith.constant 6 : index
    %c0_89 = arith.constant 0 : index
    %c0_90 = arith.constant 0 : index
    %143 = vector.load %arg2[%c6, %c0_89, %c0_90] : memref<7x2x16xf32, #tpu.memory_space<vmem>>, vector<1x2x16xf32>
    %144 = vector.shape_cast %143 : vector<1x2x16xf32> to vector<2x16xf32>
    %145 = vector.shape_cast %144 : vector<2x16xf32> to vector<2x16x1xf32>
    %146 = vector.broadcast %145 : vector<2x16x1xf32> to vector<2x16x128xf32>
    %147 = arith.mulf %146, %16 : vector<2x16x128xf32>
    %cst_91 = arith.constant dense<0.000000e+00> : vector<2x128xf32>
    %148 = vector.multi_reduction <add>, %147, %cst_91 [1] : vector<2x16x128xf32> to vector<2x128xf32>
    %c3_92 = arith.constant 3 : index
    %c0_93 = arith.constant 0 : index
    %c0_94 = arith.constant 0 : index
    %149 = vector.load %arg4[%c3_92, %c0_93, %c0_94] : memref<4x1x128xf32, #tpu.memory_space<vmem>>, vector<1x1x128xf32>
    %150 = vector.shape_cast %149 : vector<1x1x128xf32> to vector<1x128xf32>
    %151 = vector.broadcast %150 : vector<1x128xf32> to vector<2x128xf32>
    %152 = arith.addf %148, %151 : vector<2x128xf32>
    %cst_95 = arith.constant 0.000000e+00 : f32
    %153 = vector.broadcast %cst_95 : f32 to vector<2x128xf32>
    %154 = arith.cmpf ogt, %152, %153 : vector<2x128xf32>
    %cst_96 = arith.constant 0.000000e+00 : f32
    %155 = vector.broadcast %cst_96 : f32 to vector<2x128xf32>
    %156 = arith.minimumf %152, %155 : vector<2x128xf32>
    %157 = math.exp %156 : vector<2x128xf32>
    %cst_97 = arith.constant 1.000000e+00 : f32
    %158 = vector.broadcast %cst_97 : f32 to vector<2x128xf32>
    %159 = arith.subf %157, %158 : vector<2x128xf32>
    %160 = arith.select %154, %152, %159 : vector<2x128xi1>, vector<2x128xf32>
    %c6_98 = arith.constant 6 : index
    %c0_99 = arith.constant 0 : index
    %c0_100 = arith.constant 0 : index
    %161 = vector.load %arg7[%c6_98, %c0_99, %c0_100] : memref<7x2x128xf32, #tpu.memory_space<vmem>>, vector<1x2x128xf32>
    %162 = vector.shape_cast %161 : vector<1x2x128xf32> to vector<2x128xf32>
    %163 = vector.shape_cast %160 : vector<2x128xf32> to vector<1x2x128xf32>
    tpu.vector_store %arg7[%c6_98, %c0_99, %c0_100], %163 {strides = array<i32>} : memref<7x2x128xf32, #tpu.memory_space<vmem>>, vector<1x2x128xf32>,
    %164 = arith.addf %34, %76 : vector<2x128xf32>
    %165 = arith.addf %164, %118 : vector<2x128xf32>
    %166 = arith.addf %165, %160 : vector<2x128xf32>
    %c0_101 = arith.constant 0 : index
    %c0_102 = arith.constant 0 : index
    %167 = vector.load %arg5[%c0_101, %c0_102] : memref<128x128xf32, #tpu.memory_space<vmem>>, vector<128x128xf32>
    %cst_103 = arith.constant dense<0.000000e+00> : vector<2x128xf32>
    %168 = tpu.matmul %166, %167, %cst_103 {dimension_numbers = #tpu.dot_dimension_numbers<[1], [0], [0], [1], [0, 0, 1, 1], [], []>} : vector<2x128xf32>, vector<128x128xf32>, vector<2x128xf32> -> vector<2x128xf32>
    %c0_104 = arith.constant 0 : index
    %c0_105 = arith.constant 0 : index
    %c0_106 = arith.constant 0 : index
    %169 = vector.load %arg6[%c0_104, %c0_105, %c0_106] : memref<2x8x128xf32, #tpu.memory_space<vmem>>, vector<2x8x128xf32>
    %170 = vector.shape_cast %168 : vector<2x128xf32> to vector<2x1x128xf32>
    %171 = vector.broadcast %170 : vector<2x1x128xf32> to vector<2x8x128xf32>
    %172 = arith.mulf %169, %171 : vector<2x8x128xf32>
    %cst_107 = arith.constant dense<0.000000e+00> : vector<2x8xf32>
    %173 = vector.multi_reduction <add>, %172, %cst_107 [2] : vector<2x8x128xf32> to vector<2x8xf32>
    %cst_108 = arith.constant 0.000000e+00 : f32
    %174 = vector.broadcast %cst_108 : f32 to vector<2x8xf32>
    %175 = arith.subf %174, %173 : vector<2x8xf32>
    %176 = math.exp %175 : vector<2x8xf32>
    %cst_109 = arith.constant 1.000000e+00 : f32
    %177 = vector.broadcast %cst_109 : f32 to vector<2x8xf32>
    %178 = arith.addf %177, %176 : vector<2x8xf32>
    %cst_110 = arith.constant 1.000000e+00 : f32
    %179 = vector.broadcast %cst_110 : f32 to vector<2x8xf32>
    %180 = arith.divf %179, %178 : vector<2x8xf32>
    %c0_111 = arith.constant 0 : index
    %c0_112 = arith.constant 0 : index
    %181 = vector.load %arg8[%c0_111, %c0_112] : memref<2x8xf32, #tpu.memory_space<vmem>>, vector<2x8xf32>
    tpu.vector_store %arg8[%c0_111, %c0_112], %180 {strides = array<i32>} : memref<2x8xf32, #tpu.memory_space<vmem>>, vector<2x8xf32>,
    return
  }
  func.func @transform_0(%arg0: i32) -> (i32, i32) {
    %c0_i32 = arith.constant 0 : i32
    %c0_i32_0 = arith.constant 0 : i32
    return %arg0, %c0_i32 : i32, i32
  }
  func.func @transform_1(%arg0: i32) -> (i32, i32, i32) {
    %c0_i32 = arith.constant 0 : i32
    %c0_i32_0 = arith.constant 0 : i32
    %c0_i32_1 = arith.constant 0 : i32
    return %c0_i32, %arg0, %c0_i32_0 : i32, i32, i32
  }
  func.func @transform_2(%arg0: i32) -> (i32, i32, i32) {
    %c0_i32 = arith.constant 0 : i32
    %c0_i32_0 = arith.constant 0 : i32
    %c0_i32_1 = arith.constant 0 : i32
    %c0_i32_2 = arith.constant 0 : i32
    return %c0_i32, %c0_i32_0, %c0_i32_1 : i32, i32, i32
  }
  func.func @transform_3(%arg0: i32) -> (i32, i32, i32) {
    %c0_i32 = arith.constant 0 : i32
    %c0_i32_0 = arith.constant 0 : i32
    %c0_i32_1 = arith.constant 0 : i32
    %c0_i32_2 = arith.constant 0 : i32
    return %c0_i32, %c0_i32_0, %c0_i32_1 : i32, i32, i32
  }
  func.func @transform_4(%arg0: i32) -> (i32, i32) {
    %c0_i32 = arith.constant 0 : i32
    %c0_i32_0 = arith.constant 0 : i32
    %c0_i32_1 = arith.constant 0 : i32
    return %c0_i32, %c0_i32_0 : i32, i32
  }
  func.func @transform_5(%arg0: i32) -> (i32, i32, i32) {
    %c0_i32 = arith.constant 0 : i32
    %c0_i32_0 = arith.constant 0 : i32
    %c0_i32_1 = arith.constant 0 : i32
    return %arg0, %c0_i32, %c0_i32_0 : i32, i32, i32
  }
  func.func @transform_6(%arg0: i32) -> (i32, i32, i32) {
    %c0_i32 = arith.constant 0 : i32
    %c0_i32_0 = arith.constant 0 : i32
    %c0_i32_1 = arith.constant 0 : i32
    return %c0_i32, %arg0, %c0_i32_0 : i32, i32, i32
  }
  func.func @transform_7(%arg0: i32) -> (i32, i32) {
    %c0_i32 = arith.constant 0 : i32
    %c0_i32_0 = arith.constant 0 : i32
    return %arg0, %c0_i32 : i32, i32
  }
}

</mosaic_0001>

<bundles_post_ra>
// kernel: tpu_custom_call.1
= control target key start
LH: loop header
LB: loop body
LE: loop exit
PB: predicated region body
PF: predicated region fallthrough
CT: control target
= control target key end

     0   :  { %13 = vsyncpa [#allocation3], 0  ;;  %s1978_s0 = inlined_call_operand.hbm [shape: f32[32,128], index: 0, kind: input, shape index: {}]   ;;  %s1979_s1 = inlined_call_operand.hbm [shape: f32[7,2,16], index: 1, kind: input, shape index: {}]   ;;  %s1980_s2 = inlined_call_operand.hbm [shape: f32[4,128,128], index: 2, kind: input, shape index: {}]   ;;  %s1981_s3 = inlined_call_operand.vmem [shape: f32[4,1,128], index: 3, kind: input, shape index: {}]   ;;  %s1982_s4 = inlined_call_operand.hbm [shape: f32[128,128], index: 4, kind: input, shape index: {}]   ;;  %s1983_s5 = inlined_call_operand.hbm [shape: f32[2,8,128], index: 5, kind: input, shape index: {}]   ;;  %s1984_s6 = inlined_call_operand.hbm [shape: f32[7,2,128], index: 6, kind: output, shape index: {0}]   ;;  %s1985_s7 = inlined_call_operand.hbm [shape: f32[2,8], index: 7, kind: output, shape index: {1}]  }
   0x1   :  { %14 = vsyncpa [#allocation6], 0 }
   0x2   :  { %15 = vsyncpa [#allocation9], 0 }
   0x3   :  { %16 = vsyncpa [#allocation4], 0 }
   0x4   :  { %17 = vsyncpa [#allocation13], 0  ;;  %s1707_s24 = smov [#allocation5]  }
   0x5   :  { %s35_s25 = sshll.u32 %s1707_s24, 4  ;;  %s36_s25 = int_to_ptr.vmem [resolvable:$true] %s35_s25 }
   0x6   :  { %s1565_s26 = scalar_lea.vmem %s36_s25, 224  ;;  %p1570_p1 = scmp.lt.s32.totalorder %s36_s25, %s36_s25 }
   0x7   :  { %p1566_p0 = scmp.ne.s32.totalorder %s36_s25, %s1565_s26  ;;  %p1571_p2 = scmp.lt.s32.totalorder %s1565_s26, %s1565_s26 }
   0x9   :  { %p1572_p3 = por %p1571_p2, %p1570_p1 }
   0xb   :  { %p1573_p4 = pnand %p1572_p3, %p1566_p0 }
   0xd   :  { %1576 = shalt.err (!%p1573_p4)
}
   0xe   :  { %s1708_s27 = smov 32   ;;  %s1709_s28 = smov 2  }
   0xf   :  { %41 = dma.hbm_to_vmem [thread:$0]  %s1979_s1, 224, %s36_s25, [#allocation6], %s1708_s27, %s1708_s27, %s1709_s28  }
  0x10   :  { %s1710_s8 = smov [#allocation8]   ;;  %s1711_s10 = smov [#allocation2]  }
  0x11   :  { %s61_s9 = sshll.u32 %s1710_s8, 4  ;;  %s23_s11 = sshll.u32 %s1711_s10, 4  ;;  %s62_s9 = int_to_ptr.vmem [resolvable:$true] %s61_s9  ;;  %s24_s11 = int_to_ptr.vmem [resolvable:$true] %s23_s11 }
  0x12   :  { %s1585_s12 = scalar_lea.vmem %s62_s9, 2048  ;;  %p1590_p6 = scmp.lt.s32.totalorder %s62_s9, %s62_s9 }
  0x13   :  { %p1586_p5 = scmp.ne.s32.totalorder %s62_s9, %s1585_s12  ;;  %p1591_p7 = scmp.lt.s32.totalorder %s1585_s12, %s1585_s12 }
  0x15   :  { %p1592_p8 = por %p1591_p7, %p1590_p6 }
  0x17   :  { %p1593_p9 = pnand %p1592_p8, %p1586_p5 }
  0x19   :  { %1596 = shalt.err (!%p1593_p9)
}
  0x1a   :  { %s1712_s13 = smov 128   ;;  %s1713_s14 = smov 8  }
  0x1b   :  { %67 = dma.hbm_to_vmem [thread:$0]  %s1982_s4, 2048, %s62_s9, [#allocation9], %s1712_s13, %s1712_s13, %s1713_s14  }
  0x1c   :  { %s1605_s1 = scalar_lea.vmem %s24_s11, 512  ;;  %p1610_p11 = scmp.lt.s32.totalorder %s24_s11, %s24_s11 }
  0x1d   :  { %p1606_p10 = scmp.ne.s32.totalorder %s24_s11, %s1605_s1  ;;  %p1611_p12 = scmp.lt.s32.totalorder %s1605_s1, %s1605_s1 }
  0x1f   :  { %p1612_p13 = por %p1611_p12, %p1610_p11 }
  0x21   :  { %p1613_p0 = pnand %p1612_p13, %p1606_p10 }
  0x23   :  { %1616 = shalt.err (!%p1613_p0)
}
  0x24   :  { %29 = dma.hbm_to_vmem [thread:$0]  %s1978_s0, 512, %s24_s11, [#allocation3], %s1712_s13, %s1712_s13, %s1713_s14  }
  0x25   :  { %s1714_s19 = smov [#allocation7]   ;;  %s1715_s21 = smov [#allocation10]  }
  0x26   :  { %s47_s20 = sshll.u32 %s1714_s19, 4  ;;  %s73_s4 = sshll.u32 %s1715_s21, 4  ;;  %s48_s20 = int_to_ptr.vmem [resolvable:$true] %s47_s20  ;;  %s74_s4 = int_to_ptr.vmem [resolvable:$true] %s73_s4 }
  0x27   :  { %s1625_s22 = scalar_lea.vmem %s48_s20, 8192  ;;  %p1630_p2 = scmp.lt.s32.totalorder %s48_s20, %s48_s20 }
  0x28   :  { %p1626_p1 = scmp.ne.s32.totalorder %s48_s20, %s1625_s22  ;;  %p1631_p3 = scmp.lt.s32.totalorder %s1625_s22, %s1625_s22 }
  0x2a   :  { %p1632_p4 = por %p1631_p3, %p1630_p2 }
  0x2c   :  { %p1633_p5 = pnand %p1632_p4, %p1626_p1 }
  0x2e   :  { %1636 = shalt.err (!%p1633_p5)
}
  0x2f   :  { %53 = dma.hbm_to_vmem [thread:$0]  %s1980_s2, 8192, %s48_s20, [#allocation6], %s1712_s13, %s1712_s13, %s1713_s14  }
  0x30   :  { %s1645_s0 = scalar_lea.vmem %s74_s4, 256  ;;  %p1650_p7 = scmp.lt.s32.totalorder %s74_s4, %s74_s4 }
  0x31   :  { %p1646_p6 = scmp.ne.s32.totalorder %s74_s4, %s1645_s0  ;;  %p1651_p8 = scmp.lt.s32.totalorder %s1645_s0, %s1645_s0 }
  0x33   :  { %p1652_p9 = por %p1651_p8, %p1650_p7 }
  0x35   :  { %p1653_p10 = pnand %p1652_p9, %p1646_p6 }
  0x37   :  { %1656 = shalt.err (!%p1653_p10)
}
  0x38   :  { %79 = dma.hbm_to_vmem [thread:$0]  %s1983_s5, 256, %s74_s4, [#allocation9], %s1712_s13, %s1712_s13, %s1713_s14  }
  0x39   :  { %1697 = dma.done.wait [#allocation3], 512  }
  0x3a   :  { %1698 = vsyncadd [#allocation3], 4294966784 }
  0x3b   :  { %1699 = dma.done.wait [#allocation6], 8416  }
  0x3c   :  { %1700 = vsyncadd [#allocation6], 4294958880 }
  0x3d   :  { %1701 = dma.done.wait [#allocation9], 2304  }
  0x3e   :  { %1702 = vsyncadd [#allocation9], 4294964992  ;;  %v114_v0 = vld [vmem:[#allocation7 + $0x78] sm:$0xff]  ;;  %v113_v2 = vld [vmem:[#allocation7 + $0x70] sm:$0xff]  ;;  %v507_v58 = vlaneseq  ;;  %vm1717_vm0 = vmmov 0   ;;  %vm571_vm2 = vcmask 1041409  }
  0x3f   :  { %v216_v1 = vld [vmem:[#allocation7 + $0xf8] sm:$0xff]  ;;  %1320 = vmatprep.subr.mxu0 %v114_v0  ;;  %v215_v3 = vld [vmem:[#allocation7 + $0xf0] sm:$0xff]  ;;  %v112_v4 = vld [vmem:[#allocation7 + $0x68] sm:$0xff]  ;;  %vm1162_vm14 = vcmask 58368  }
  0x40   :  { %1358 = vmatprep.subr.mxu1 %v216_v1  ;;  %1321 = vmatpush3.msra.mxu0 %v114_v0  ;;  %v214_v5 = vld [vmem:[#allocation7 + $0xe8] sm:$0xff]  ;;  %v111_v6 = vld [vmem:[#allocation7 + $0x60] sm:$0xff]  ;;  %v110_v8 = vld [vmem:[#allocation7 + $0x58] sm:$0xff]  ;;  %v1808_v63 = vshrl.u32 %v507_v58, 7 }
  0x41   :  { %1359 = vmatpush3.msra.mxu1 %v216_v1  ;;  %1322 = vmatprep.subr.mxu0 %v113_v2  ;;  %v213_v7 = vld [vmem:[#allocation7 + $0xe0] sm:$0xff]  ;;  %v212_v9 = vld [vmem:[#allocation7 + $0xd8] sm:$0xff]  ;;  %v109_v10 = vld [vmem:[#allocation7 + $0x50] sm:$0xff] }
  0x42   :  { %1360 = vmatprep.subr.mxu1 %v215_v3  ;;  %1323 = vmatpush3.msra.mxu0 %v113_v2  ;;  %v211_v11 = vld [vmem:[#allocation7 + $0xd0] sm:$0xff]  ;;  %v108_v12 = vld [vmem:[#allocation7 + $0x48] sm:$0xff]  ;;  %v107_v14 = vld [vmem:[#allocation7 + $0x40] sm:$0xff] }
  0x43   :  { %1361 = vmatpush3.msra.mxu1 %v215_v3  ;;  %1324 = vmatprep.subr.mxu0 %v112_v4  ;;  %v210_v13 = vld [vmem:[#allocation7 + $0xc8] sm:$0xff]  ;;  %v209_v15 = vld [vmem:[#allocation7 + $0xc0] sm:$0xff]  ;;  %v106_v16 = vld [vmem:[#allocation7 + $0x38] sm:$0xff] }
  0x44   :  { %1362 = vmatprep.subr.mxu1 %v214_v5  ;;  %1325 = vmatpush3.msra.mxu0 %v112_v4  ;;  %v208_v17 = vld [vmem:[#allocation7 + $0xb8] sm:$0xff]  ;;  %v105_v18 = vld [vmem:[#allocation7 + $0x30] sm:$0xff]  ;;  %v104_v20 = vld [vmem:[#allocation7 + $0x28] sm:$0xff]  ;;  %v520_v4 = vsub.s32 1, %v1808_v63 }
  0x45   :  { %1363 = vmatpush3.msra.mxu1 %v214_v5  ;;  %1326 = vmatprep.subr.mxu0 %v111_v6  ;;  %v207_v19 = vld [vmem:[#allocation7 + $0xb0] sm:$0xff]  ;;  %v206_v21 = vld [vmem:[#allocation7 + $0xa8] sm:$0xff]  ;;  %v103_v22 = vld [vmem:[#allocation7 + $0x20] sm:$0xff] }
  0x46   :  { %1364 = vmatprep.subr.mxu1 %v213_v7  ;;  %1327 = vmatpush3.msra.mxu0 %v111_v6  ;;  %v205_v23 = vld [vmem:[#allocation7 + $0xa0] sm:$0xff]  ;;  %v102_v24 = vld [vmem:[#allocation7 + $0x18] sm:$0xff]  ;;  %v101_v26 = vld [vmem:[#allocation7 + $0x10] sm:$0xff] }
  0x47   :  { %1365 = vmatpush3.msra.mxu1 %v213_v7  ;;  %1328 = vmatprep.subr.mxu0 %v110_v8  ;;  %v204_v25 = vld [vmem:[#allocation7 + $0x98] sm:$0xff]  ;;  %v203_v27 = vld [vmem:[#allocation7 + $0x90] sm:$0xff]  ;;  %v100_v28 = vld [vmem:[#allocation7 + $0x8] sm:$0xff] }
  0x48   :  { %1366 = vmatprep.subr.mxu1 %v212_v9  ;;  %1329 = vmatpush3.msra.mxu0 %v110_v8  ;;  %v202_v29 = vld [vmem:[#allocation7 + $0x88] sm:$0xff]  ;;  %v99_v30 = vld [vmem:[#allocation7] sm:$0xff]  ;;  %v1791_v32 = vld [vmem:[#allocation2] sm:$0xff] }
  0x49   :  { %1367 = vmatpush3.msra.mxu1 %v212_v9  ;;  %1330 = vmatprep.subr.mxu0 %v109_v10  ;;  %v201_v31 = vld [vmem:[#allocation7 + $0x80] sm:$0xff]  ;;  %v318_v34 = vld [vmem:[#allocation7 + $0x178] sm:$0xff]  ;;  %v317_v36 = vld [vmem:[#allocation7 + $0x170] sm:$0xff] }
  0x4a   :  { %1368 = vmatprep.subr.mxu1 %v211_v11  ;;  %1331 = vmatpush3.msra.mxu0 %v109_v10  ;;  %v1793_v33 = vld [vmem:[#allocation2 + $0x8] sm:$0xff]  ;;  %v419_v37 = vld [vmem:[#allocation7 + $0x1f0] sm:$0xff]  ;;  %v1799_v38 = vld [vmem:[#allocation2 + $0x10] sm:$0xff] }
  0x4b   :  { %1369 = vmatpush3.msra.mxu1 %v211_v11  ;;  %1332 = vmatprep.subr.mxu0 %v108_v12  ;;  %v420_v35 = vld [vmem:[#allocation7 + $0x1f8] sm:$0xff]  ;;  %v1801_v39 = vld [vmem:[#allocation2 + $0x18] sm:$0xff]  ;;  %v315_v42 = vld [vmem:[#allocation7 + $0x160] sm:$0xff]  ;;  %v1814_v11 = vsub.s32 0, %v1808_v63 }
  0x4c   :  { %1370 = vmatprep.subr.mxu1 %v210_v13  ;;  %1333 = vmatpush3.msra.mxu0 %v108_v12  ;;  %v316_v40 = vld [vmem:[#allocation7 + $0x168] sm:$0xff]  ;;  %v417_v43 = vld [vmem:[#allocation7 + $0x1e0] sm:$0xff]  ;;  %v314_v44 = vld [vmem:[#allocation7 + $0x158] sm:$0xff] }
  0x4d   :  { %1371 = vmatpush3.msra.mxu1 %v210_v13  ;;  %1334 = vmatprep.subr.mxu0 %v107_v14  ;;  %v418_v41 = vld [vmem:[#allocation7 + $0x1e8] sm:$0xff]  ;;  %v416_v45 = vld [vmem:[#allocation7 + $0x1d8] sm:$0xff]  ;;  %v313_v46 = vld [vmem:[#allocation7 + $0x150] sm:$0xff] }
  0x4e   :  { %1372 = vmatprep.subr.mxu1 %v209_v15  ;;  %1335 = vmatpush3.msra.mxu0 %v107_v14  ;;  %v415_v47 = vld [vmem:[#allocation7 + $0x1d0] sm:$0xff]  ;;  %v312_v48 = vld [vmem:[#allocation7 + $0x148] sm:$0xff]  ;;  %v311_v50 = vld [vmem:[#allocation7 + $0x140] sm:$0xff] }
  0x4f   :  { %1373 = vmatpush3.msra.mxu1 %v209_v15  ;;  %1336 = vmatprep.subr.mxu0 %v106_v16  ;;  %v414_v49 = vld [vmem:[#allocation7 + $0x1c8] sm:$0xff]  ;;  %v413_v51 = vld [vmem:[#allocation7 + $0x1c0] sm:$0xff]  ;;  %v310_v52 = vld [vmem:[#allocation7 + $0x138] sm:$0xff] }
  0x50   :  { %1374 = vmatprep.subr.mxu1 %v208_v17  ;;  %1337 = vmatpush3.msra.mxu0 %v106_v16  ;;  %v412_v53 = vld [vmem:[#allocation7 + $0x1b8] sm:$0xff]  ;;  %v309_v54 = vld [vmem:[#allocation7 + $0x130] sm:$0xff]  ;;  %v308_v56 = vld [vmem:[#allocation7 + $0x128] sm:$0xff] }
  0x51   :  { %1375 = vmatpush3.msra.mxu1 %v208_v17  ;;  %1338 = vmatprep.subr.mxu0 %v105_v18  ;;  %v411_v55 = vld [vmem:[#allocation7 + $0x1b0] sm:$0xff]  ;;  %v410_v57 = vld [vmem:[#allocation7 + $0x1a8] sm:$0xff]  ;;  %v307_v59 = vld [vmem:[#allocation7 + $0x120] sm:$0xff] }
  0x52   :  { %1376 = vmatprep.subr.mxu1 %v207_v19  ;;  %1339 = vmatpush3.msra.mxu0 %v105_v18  ;;  %v409_v60 = vld [vmem:[#allocation7 + $0x1a0] sm:$0xff]  ;;  %v306_v61 = vld [vmem:[#allocation7 + $0x118] sm:$0xff]  ;;  %v305_v0 = vld [vmem:[#allocation7 + $0x110] sm:$0xff] }
  0x53   :  { %1377 = vmatpush3.msra.mxu1 %v207_v19  ;;  %1340 = vmatprep.subr.mxu0 %v104_v20  ;;  %v408_v62 = vld [vmem:[#allocation7 + $0x198] sm:$0xff]  ;;  %v407_v1 = vld [vmem:[#allocation7 + $0x190] sm:$0xff]  ;;  %v304_v2 = vld [vmem:[#allocation7 + $0x108] sm:$0xff] }
  0x54   :  { %1378 = vmatprep.subr.mxu1 %v206_v21  ;;  %1341 = vmatpush3.msra.mxu0 %v104_v20  ;;  %v406_v3 = vld [vmem:[#allocation7 + $0x188] sm:$0xff]  ;;  %v646_v5 = vld [vmem:[#allocation5 + $0x4] sm:$0x3]  ;;  %v506_v6 = vld [vmem:[#allocation5] sm:$0x3] }
  0x55   :  { %1379 = vmatpush3.msra.mxu1 %v206_v21  ;;  %1342 = vmatprep.subr.mxu0 %v103_v22  ;;  %v303_v7 = vld [vmem:[#allocation7 + $0x100] sm:$0xff]  ;;  %v661_v9 = vrot.slane %v646_v5, %v520_v4  ;;  %v521_v10 = vrot.slane %v506_v6, %v520_v4  ;;  %v510_v12 = vrot.slane %v506_v6, %v1814_v11  ;;  %v787_v14 = vld [vmem:[#allocation5 + $0x8] sm:$0x3]  ;;  %v928_v17 = vld [vmem:[#allocation5 + $0xc] sm:$0x3] }
  0x56   :  { %1380 = vmatprep.subr.mxu1 %v205_v23  ;;  %1343 = vmatpush3.msra.mxu0 %v103_v22  ;;  %v405_v8 = vld [vmem:[#allocation7 + $0x180] sm:$0xff]  ;;  %v650_v13 = vrot.slane %v646_v5, %v1814_v11  ;;  %v802_v15 = vrot.slane %v787_v14, %v520_v4  ;;  %v791_v16 = vrot.slane %v787_v14, %v1814_v11  ;;  %v576_v20 = vld [vmem:[#allocation5 + $0x2] sm:$0x3]  ;;  %v717_v22 = vld [vmem:[#allocation5 + $0x6] sm:$0x3] }
  0x57   :  { %1381 = vmatpush3.msra.mxu1 %v205_v23  ;;  %1344 = vmatprep.subr.mxu0 %v102_v24  ;;  %v943_v18 = vrot.slane %v928_v17, %v520_v4  ;;  %v932_v19 = vrot.slane %v928_v17, %v1814_v11  ;;  %v591_v21 = vrot.slane %v576_v20, %v520_v4 }
  0x58   :  { %1382 = vmatprep.subr.mxu1 %v204_v25  ;;  %1345 = vmatpush3.msra.mxu0 %v102_v24  ;;  %v732_v23 = vrot.slane %v717_v22, %v520_v4  ;;  %v1826_v24 = vld [vmem:[#allocation5 + $0xa] sm:$0x3] }
  0x59   :  { %1383 = vmatpush3.msra.mxu1 %v204_v25  ;;  %1346 = vmatprep.subr.mxu0 %v101_v26  ;;  %v873_v25 = vrot.slane %v1826_v24, %v520_v4 }
  0x5a   :  { %1384 = vmatprep.subr.mxu1 %v203_v27  ;;  %1347 = vmatpush3.msra.mxu0 %v101_v26  ;;  %v580_v26 = vrot.slane %v576_v20, %v1814_v11 }
  0x5b   :  { %1385 = vmatpush3.msra.mxu1 %v203_v27  ;;  %1348 = vmatprep.subr.mxu0 %v100_v28  ;;  %v721_v27 = vrot.slane %v717_v22, %v1814_v11 }
  0x5c   :  { %1386 = vmatprep.subr.mxu1 %v202_v29  ;;  %1349 = vmatpush3.msra.mxu0 %v100_v28  ;;  %v1716_v28 = vmov 0.0  }
  0x5d   :  { %1387 = vmatpush3.msra.mxu1 %v202_v29  ;;  %1350 = vmatprep.subr.mxu0 %v99_v30  ;;  %v1019_v29 = vld [vmem:[#allocation8 + $0x78] sm:$0xff] }
  0x5e   :  { %1388 = vmatprep.subr.mxu1 %v201_v31  ;;  %1351 = vmatpush3.msra.mxu0 %v99_v30  ;;  %v1018_v30 = vld [vmem:[#allocation8 + $0x70] sm:$0xff] }
  0x5f   :  { %1352 = vmatprep.mubr.f32.mxu0 %v1791_v32  ;;  %1389 = vmatpush3.msra.mxu1 %v201_v31  ;;  %v1017_v31 = vld [vmem:[#allocation8 + $0x68] sm:$0xff] }
  0x60   :  { %1390 = vmatprep.mubr.f32.mxu1 %v1791_v32  ;;  %1353 = vmatmul.mubr.f32.vlgmr.msra.gmra.mxu0 %v1793_v33 }
  0x61   :  { %1391 = vmatmul.mubr.f32.vlgmr.msra.gmra.mxu1 %v1793_v33  ;;  %1396 = vmatprep.subr.mxu0 %v318_v34 }
  0x62   :  { %1434 = vmatprep.subr.mxu1 %v420_v35  ;;  %1397 = vmatpush3.msra.mxu0 %v318_v34  ;;  %v1014_v34 = vld [vmem:[#allocation8 + $0x50] sm:$0xff] }
  0x63   :  { %1435 = vmatpush3.msra.mxu1 %v420_v35  ;;  %1398 = vmatprep.subr.mxu0 %v317_v36  ;;  %v1013_v35 = vld [vmem:[#allocation8 + $0x48] sm:$0xff] }
  0x64   :  { %1436 = vmatprep.subr.mxu1 %v419_v37  ;;  %1355 = vmatprep.mubr.f32.mxu0 %v1799_v38 }
  0x65   :  { %1393 = vmatprep.mubr.f32.mxu1 %v1799_v38  ;;  %1399 = vmatpush3.msra.mxu0 %v317_v36  ;;  %v1012_v36 = vld [vmem:[#allocation8 + $0x40] sm:$0xff] }
  0x66   :  { %1437 = vmatpush3.msra.mxu1 %v419_v37  ;;  %1356 = vmatmul.mubr.f32.gmra.mxu0 %v1801_v39  ;;  %v1011_v37 = vld [vmem:[#allocation8 + $0x38] sm:$0xff] }
  0x67   :  { %1394 = vmatmul.mubr.f32.gmra.mxu1 %v1801_v39  ;;  %1400 = vmatprep.subr.mxu0 %v316_v40 }
  0x68   :  { %1438 = vmatprep.subr.mxu1 %v418_v41  ;;  %1401 = vmatpush3.msra.mxu0 %v316_v40  ;;  %v1008_v40 = vld [vmem:[#allocation8 + $0x20] sm:$0xff] }
  0x69   :  { %1439 = vmatpush3.msra.mxu1 %v418_v41  ;;  %1402 = vmatprep.subr.mxu0 %v315_v42  ;;  %v1007_v41 = vld [vmem:[#allocation8 + $0x18] sm:$0xff] }
  0x6a   :  { %1440 = vmatprep.subr.mxu1 %v417_v43  ;;  %1403 = vmatpush3.msra.mxu0 %v315_v42  ;;  %v1006_v42 = vld [vmem:[#allocation8 + $0x10] sm:$0xff] }
  0x6b   :  { %1441 = vmatpush3.msra.mxu1 %v417_v43  ;;  %1404 = vmatprep.subr.mxu0 %v314_v44 }
  0x6c   :  { %1442 = vmatprep.subr.mxu1 %v416_v45  ;;  %1405 = vmatpush3.msra.mxu0 %v314_v44 }
  0x6d   :  { %1443 = vmatpush3.msra.mxu1 %v416_v45  ;;  %1406 = vmatprep.subr.mxu0 %v313_v46  ;;  %v1005_v45 = vld [vmem:[#allocation8 + $0x8] sm:$0xff] }
  0x6e   :  { %1444 = vmatprep.subr.mxu1 %v415_v47  ;;  %1407 = vmatpush3.msra.mxu0 %v313_v46  ;;  %v1004_v46 = vld [vmem:[#allocation8] sm:$0xff] }
  0x6f   :  { %1445 = vmatpush3.msra.mxu1 %v415_v47  ;;  %1408 = vmatprep.subr.mxu0 %v312_v48 }
  0x70   :  { %1446 = vmatprep.subr.mxu1 %v414_v49  ;;  %1409 = vmatpush3.msra.mxu0 %v312_v48 }
  0x71   :  { %1447 = vmatpush3.msra.mxu1 %v414_v49  ;;  %1410 = vmatprep.subr.mxu0 %v311_v50 }
  0x72   :  { %1448 = vmatprep.subr.mxu1 %v413_v51  ;;  %1411 = vmatpush3.msra.mxu0 %v311_v50 }
  0x73   :  { %1449 = vmatpush3.msra.mxu1 %v413_v51  ;;  %1412 = vmatprep.subr.mxu0 %v310_v52 }
  0x74   :  { %1450 = vmatprep.subr.mxu1 %v412_v53  ;;  %1413 = vmatpush3.msra.mxu0 %v310_v52 }
  0x75   :  { %1451 = vmatpush3.msra.mxu1 %v412_v53  ;;  %1414 = vmatprep.subr.mxu0 %v309_v54 }
  0x76   :  { %1452 = vmatprep.subr.mxu1 %v411_v55  ;;  %1415 = vmatpush3.msra.mxu0 %v309_v54 }
  0x77   :  { %1453 = vmatpush3.msra.mxu1 %v411_v55  ;;  %1416 = vmatprep.subr.mxu0 %v308_v56 }
  0x78   :  { %1454 = vmatprep.subr.mxu1 %v410_v57  ;;  %1417 = vmatpush3.msra.mxu0 %v308_v56 }
  0x79   :  { %1455 = vmatpush3.msra.mxu1 %v410_v57  ;;  %1418 = vmatprep.subr.mxu0 %v307_v59 }
  0x7a   :  { %1456 = vmatprep.subr.mxu1 %v409_v60  ;;  %1419 = vmatpush3.msra.mxu0 %v307_v59 }
  0x7b   :  { %1457 = vmatpush3.msra.mxu1 %v409_v60  ;;  %1420 = vmatprep.subr.mxu0 %v306_v61 }
  0x7c   :  { %1458 = vmatprep.subr.mxu1 %v408_v62  ;;  %1421 = vmatpush3.msra.mxu0 %v306_v61 }
  0x7d   :  { %1459 = vmatpush3.msra.mxu1 %v408_v62  ;;  %1422 = vmatprep.subr.mxu0 %v305_v0 }
  0x7e   :  { %1460 = vmatprep.subr.mxu1 %v407_v1  ;;  %1423 = vmatpush3.msra.mxu0 %v305_v0 }
  0x7f   :  { %1461 = vmatpush3.msra.mxu1 %v407_v1  ;;  %1424 = vmatprep.subr.mxu0 %v304_v2 }
  0x80   :  { %1462 = vmatprep.subr.mxu1 %v406_v3  ;;  %1425 = vmatpush3.msra.mxu0 %v304_v2 }
  0x81   :  { %1463 = vmatpush3.msra.mxu1 %v406_v3  ;;  %1426 = vmatprep.subr.mxu0 %v303_v7 }
  0x82   :  { %1464 = vmatprep.subr.mxu1 %v405_v8  ;;  %1427 = vmatpush3.msra.mxu0 %v303_v7 }
  0x83   :  { %1428 = vmatprep.mubr.f32.mxu0 %v1791_v32  ;;  %1465 = vmatpush3.msra.mxu1 %v405_v8 }
  0x84   :  { %1466 = vmatprep.mubr.f32.mxu1 %v1791_v32  ;;  %663 = vbcast.lane.b32.xlu1 %v661_v9, 256  ;;  %v1016_v32 = vld [vmem:[#allocation8 + $0x60] sm:$0xff] }
  0x85   :  { %523 = vbcast.lane.b32.xlu0 %v521_v10, 256  ;;  %1429 = vmatmul.mubr.f32.vlgmr.msra.gmra.mxu0 %v1793_v33 }
  0x86   :  { %1467 = vmatmul.mubr.f32.vlgmr.msra.gmra.mxu1 %v1793_v33  ;;  %1431 = vmatprep.mubr.f32.mxu0 %v1799_v38  ;;  %v1015_v33 = vld [vmem:[#allocation8 + $0x58] sm:$0xff] }
  0x87   :  { %1469 = vmatprep.mubr.f32.mxu1 %v1799_v38  ;;  %1472 = vmatprep.subr.mxu0 %v1716_v28  ;;  %v1010_v38 = vld [vmem:[#allocation8 + $0x30] sm:$0xff] }
  0x88   :  { %667 = vbcast.lane.b32.xlu1 %v661_v9, 264  ;;  %1473 = vmatpush3.msra.mxu0 %v1019_v29 }
  0x89   :  { %527 = vbcast.lane.b32.xlu0 %v521_v10, 264  ;;  %1432 = vmatmul.mubr.f32.gmra.mxu0 %v1801_v39 }
  0x8a   :  { %1470 = vmatmul.mubr.f32.gmra.mxu1 %v1801_v39  ;;  %1474 = vmatprep.subr.mxu0 %v1716_v28  ;;  %v1009_v39 = vld [vmem:[#allocation8 + $0x28] sm:$0xff] }
  0x8b   :  { %1475 = vmatpush3.msra.mxu0 %v1018_v30  ;;  %1504 = vmatprep.mubr.msk.f32.mxu0 %vm1717_vm0, %v1716_v28 }
  0x8c   :  { %516 = vbcast.lane.b32.xlu1 %v510_v12, 264  ;;  %1476 = vmatprep.subr.mxu0 %v1716_v28 }
  0x8d   :  { %512 = vbcast.lane.b32.xlu0 %v510_v12, 256  ;;  %1477 = vmatpush3.msra.mxu0 %v1017_v31 }
  0x8e   :  { %1478 = vmatprep.subr.mxu0 %v1716_v28 }
  0x8f   :  { %1479 = vmatpush3.msra.mxu0 %v1016_v32 }
  0x90   :  { %656 = vbcast.lane.b32.xlu1 %v650_v13, 264  ;;  %1480 = vmatprep.subr.mxu0 %v1716_v28 }
  0x91   :  { %652 = vbcast.lane.b32.xlu0 %v650_v13, 256  ;;  %1481 = vmatpush3.msra.mxu0 %v1015_v33 }
  0x92   :  { %1482 = vmatprep.subr.mxu0 %v1716_v28 }
  0x93   :  { %1483 = vmatpush3.msra.mxu0 %v1014_v34 }
  0x94   :  { %808 = vbcast.lane.b32.xlu1 %v802_v15, 264  ;;  %1484 = vmatprep.subr.mxu0 %v1716_v28 }
  0x95   :  { %804 = vbcast.lane.b32.xlu0 %v802_v15, 256  ;;  %1485 = vmatpush3.msra.mxu0 %v1013_v35 }
  0x96   :  { %1486 = vmatprep.subr.mxu0 %v1716_v28 }
  0x97   :  { %1487 = vmatpush3.msra.mxu0 %v1012_v36 }
  0x98   :  { %797 = vbcast.lane.b32.xlu1 %v791_v16, 264  ;;  %1488 = vmatprep.subr.mxu0 %v1716_v28 }
  0x99   :  { %793 = vbcast.lane.b32.xlu0 %v791_v16, 256  ;;  %1489 = vmatpush3.msra.mxu0 %v1011_v37 }
  0x9a   :  { %1490 = vmatprep.subr.mxu0 %v1716_v28 }
  0x9b   :  { %1491 = vmatpush3.msra.mxu0 %v1010_v38 }
  0x9c   :  { %949 = vbcast.lane.b32.xlu1 %v943_v18, 264  ;;  %1492 = vmatprep.subr.mxu0 %v1716_v28 }
  0x9d   :  { %945 = vbcast.lane.b32.xlu0 %v943_v18, 256  ;;  %1493 = vmatpush3.msra.mxu0 %v1009_v39 }
  0x9e   :  { %1494 = vmatprep.subr.mxu0 %v1716_v28 }
  0x9f   :  { %1495 = vmatpush3.msra.mxu0 %v1008_v40 }
  0xa0   :  { %938 = vbcast.lane.b32.xlu1 %v932_v19, 264  ;;  %1496 = vmatprep.subr.mxu0 %v1716_v28 }
  0xa1   :  { %934 = vbcast.lane.b32.xlu0 %v932_v19, 256  ;;  %1497 = vmatpush3.msra.mxu0 %v1007_v41 }
  0xa2   :  { %1498 = vmatprep.subr.mxu0 %v1716_v28 }
  0xa3   :  { %1499 = vmatpush3.msra.mxu0 %v1006_v42 }
  0xa4   :  { %597 = vbcast.lane.b32.xlu1 %v591_v21, 264  ;;  %1500 = vmatprep.subr.mxu0 %v1716_v28 }
  0xa5   :  { %593 = vbcast.lane.b32.xlu0 %v591_v21, 256  ;;  %1501 = vmatpush3.msra.mxu0 %v1005_v45 }
  0xa6   :  { %1502 = vmatprep.subr.mxu0 %v1716_v28 }
  0xa7   :  { %1503 = vmatpush3.msra.mxu0 %v1004_v46 }
  0xa8   :  { %738 = vbcast.lane.b32.xlu1 %v732_v23, 264 }
  0xa9   :  { %734 = vbcast.lane.b32.xlu0 %v732_v23, 256 }
  0xac   :  { %879 = vbcast.lane.b32.xlu1 %v873_v25, 264 }
  0xad   :  { %875 = vbcast.lane.b32.xlu0 %v873_v25, 256 }
  0xb0   :  { %586 = vbcast.lane.b32.xlu1 %v580_v26, 264 }
  0xb1   :  { %582 = vbcast.lane.b32.xlu0 %v580_v26, 256 }
  0xb4   :  { %727 = vbcast.lane.b32.xlu1 %v721_v27, 264 }
  0xb5   :  { %723 = vbcast.lane.b32.xlu0 %v721_v27, 256 }
  0xf6   :  { %v1831_v43 = vpop.permute.xlu1 %663 }
  0xf7   :  { %v1833_v44 = vpop.permute.xlu0 %523 }
  0xfa   :  { %v668_v47 = vpop.permute.xlu1 %667 }
  0xfb   :  { %v528_v48 = vpop.permute.xlu0 %527 }
  0xfe   :  { %v517_v49 = vpop.permute.xlu1 %516 }
  0xff   :  { %v513_v50 = vpop.permute.xlu0 %512 }
 0x102   :  { %v657_v51 = vpop.permute.xlu1 %656 }
 0x103   :  { %v653_v52 = vpop.permute.xlu0 %652 }
 0x106   :  { %v1835_v53 = vpop.permute.xlu1 %808 }
 0x107   :  { %v1837_v54 = vpop.permute.xlu0 %804 }
 0x10a   :  { %v1839_v55 = vpop.permute.xlu1 %797 }
 0x10b   :  { %v1841_v56 = vpop.permute.xlu0 %793 }
 0x10e   :  { %v1843_v57 = vpop.permute.xlu1 %949 }
 0x10f   :  { %v1845_v59 = vpop.permute.xlu0 %945 }
 0x112   :  { %v1847_v60 = vpop.permute.xlu1 %938 }
 0x113   :  { %v1849_v61 = vpop.permute.xlu0 %934 }
 0x116   :  { %v598_v62 = vpop.permute.xlu1 %597 }
 0x117   :  { %v594_v0 = vpop.permute.xlu0 %593 }
 0x11a   :  { %v739_v1 = vpop.permute.xlu1 %738 }
 0x11b   :  { %v735_v2 = vpop.permute.xlu0 %734 }
 0x11e   :  { %v1851_v3 = vpop.permute.xlu1 %879 }
 0x11f   :  { %v1853_v4 = vpop.permute.xlu0 %875 }
 0x120   :  { %v1354_v5 = vpop.f32.mrf.mxu0 }
 0x121   :  { %v1392_v6 = vpop.f32.mrf.mxu1  ;;  %v530_v9 = vmul.f32 %v1354_v5, %v517_v49 }
 0x122   :  { %v587_v7 = vpop.permute.xlu1 %586  ;;  %v670_v10 = vmul.f32 %v1392_v6, %v657_v51  ;;  %v181_v13 = vpop.f32.mrf.mxu0 }
 0x123   :  { %v583_v8 = vpop.permute.xlu0 %582  ;;  %v600_v12 = vmul.f32 %v1354_v5, %v587_v7  ;;  %v283_v14 = vpop.f32.mrf.mxu1  ;;  %v529_v15 = vmul.f32 %v513_v50, %v181_v13 }
 0x124   :  { %v599_v16 = vmul.f32 %v583_v8, %v181_v13  ;;  %v669_v17 = vmul.f32 %v653_v52, %v283_v14 }
 0x125   :  { %v533_v20 = vadd.f32 %v530_v9, %v529_v15  ;;  %v1197_v15 = vld [vmem:[%s1981_s3] ss:$0 sm:$0xff] }
 0x126   :  { %v728_v18 = vpop.permute.xlu1 %727  ;;  %v603_v21 = vadd.f32 %v600_v12, %v599_v16  ;;  %v673_v22 = vadd.f32 %v670_v10, %v669_v17  ;;  %v1357_v26 = vpop.f32.mrf.mxu0  ;;  %v1204_v16 = vld [vmem:[%s1981_s3 + $0x1] ss:$0 sm:$0xff] }
 0x127   :  { %v724_v19 = vpop.permute.xlu0 %723  ;;  %v741_v23 = vmul.f32 %v1392_v6, %v728_v18  ;;  %v1395_v27 = vpop.f32.mrf.mxu1  ;;  %v534_v28 = vrot.slane %v533_v20, 4  ;;  %v532_v31 = vmul.f32 %v1357_v26, %v528_v48  ;;  %v602_v33 = vmul.f32 %v1357_v26, %v598_v62 }
 0x128   :  { %v740_v25 = vmul.f32 %v724_v19, %v283_v14  ;;  %v604_v29 = vrot.slane %v603_v21, 4  ;;  %v674_v30 = vrot.slane %v673_v22, 4  ;;  %v672_v34 = vmul.f32 %v1395_v27, %v668_v47  ;;  %v191_v36 = vpop.f32.mrf.mxu0 }
 0x129   :  { %v743_v35 = vmul.f32 %v1395_v27, %v739_v1  ;;  %v293_v37 = vpop.f32.mrf.mxu1  ;;  %v535_v38 = vadd.f32 %v534_v28, %v533_v20  ;;  %v531_v41 = vmul.f32 %v1833_v44, %v191_v36  ;;  %v601_v45 = vmul.f32 %v594_v0, %v191_v36 }
 0x12a   :  { %v744_v32 = vadd.f32 %v741_v23, %v740_v25  ;;  %v605_v39 = vadd.f32 %v604_v29, %v603_v21  ;;  %v675_v40 = vadd.f32 %v674_v30, %v673_v22  ;;  %v671_v46 = vmul.f32 %v1831_v43, %v293_v37 }
 0x12b   :  { %v742_v49 = vmul.f32 %v735_v2, %v293_v37  ;;  %v536_v50 = vrot.slane %v535_v38, 2  ;;  %v540_v48 = vadd.f32 %v532_v31, %v531_v41  ;;  %v610_v62 = vadd.f32 %v602_v33, %v601_v45 }
 0x12c   :  { %v745_v42 = vrot.slane %v744_v32, 4  ;;  %v606_v51 = vrot.slane %v605_v39, 2  ;;  %v676_v52 = vrot.slane %v675_v40, 2  ;;  %v680_v47 = vadd.f32 %v672_v34, %v671_v46 }
 0x12d   :  { %v751_v1 = vadd.f32 %v743_v35, %v742_v49  ;;  %v537_v6 = vadd.f32 %v536_v50, %v535_v38  ;;  %v541_v9 = vrot.slane %v540_v48, 4  ;;  %v611_v12 = vrot.slane %v610_v62, 4 }
 0x12e   :  { %v746_v5 = vadd.f32 %v745_v42, %v744_v32  ;;  %v607_v7 = vadd.f32 %v606_v51, %v605_v39  ;;  %v677_v8 = vadd.f32 %v676_v52, %v675_v40  ;;  %v681_v44 = vrot.slane %v680_v47, 4 }
 0x12f   :  { %v752_v13 = vrot.slane %v751_v1, 4  ;;  %v538_v0 = vrot.slane %v537_v6, 1  ;;  %v542_v2 = vadd.f32 %v541_v9, %v540_v48  ;;  %v612_v18 = vadd.f32 %v611_v12, %v610_v62 }
 0x130   :  { %v747_v10 = vrot.slane %v746_v5, 2  ;;  %v608_v14 = vrot.slane %v607_v7, 1  ;;  %v678_v43 = vrot.slane %v677_v8, 1  ;;  %v682_v19 = vadd.f32 %v681_v44, %v680_v47 }
 0x131   :  { %v753_v20 = vadd.f32 %v752_v13, %v751_v1  ;;  %v539_v21 = vadd.f32 %v538_v0, %v537_v6  ;;  %v543_v25 = vrot.slane %v542_v2, 2  ;;  %v613_v27 = vrot.slane %v612_v18, 2 }
 0x132   :  { %v748_v17 = vadd.f32 %v747_v10, %v746_v5  ;;  %v609_v22 = vadd.f32 %v608_v14, %v607_v7  ;;  %v679_v23 = vadd.f32 %v678_v43, %v677_v8  ;;  %v683_v28 = vrot.slane %v682_v19, 2 }
 0x133   :  { %v754_v29 = vrot.slane %v753_v20, 2  ;;  %v1863_v30 = vadd.f32 %v1197_v15, %v539_v21  ;;  %v544_v33 = vadd.f32 %v543_v25, %v542_v2  ;;  %v614_v35 = vadd.f32 %v613_v27, %v612_v18 }
 0x134   :  { %v749_v26 = vrot.slane %v748_v17, 1  ;;  %v1865_v31 = vadd.f32 %v1197_v15, %v609_v22  ;;  %v1867_v32 = vadd.f32 %v1204_v16, %v679_v23  ;;  %v684_v36 = vadd.f32 %v683_v28, %v682_v19 }
 0x135   :  { %v558_v37 = vmin.f32 %v1863_v30, 0.0  ;;  %v755_v39 = vadd.f32 %v754_v29, %v753_v20  ;;  %v545_v42 = vrot.slane %v544_v33, 1  ;;  %v615_v45 = vrot.slane %v614_v35, 1 }
 0x136   :  { %v750_v34 = vadd.f32 %v749_v26, %v748_v17  ;;  %v628_v38 = vmin.f32 %v1865_v31, 0.0  ;;  %v699_v40 = vmin.f32 %v1867_v32, 0.0  ;;  %v685_v46 = vrot.slane %v684_v36, 1 }
 0x137   :  { %v560_v49 = vmul.f32 1.442695, %v558_v37  ;;  %v546_v51 = vadd.f32 %v545_v42, %v544_v33  ;;  %v616_v48 = vadd.f32 %v615_v45, %v614_v35  ;;  %v756_v62 = vrot.slane %v755_v39, 1 }
 0x138   :  { %v1872_v41 = vadd.f32 %v1204_v16, %v750_v34  ;;  %v630_v52 = vmul.f32 1.442695, %v628_v38  ;;  %v686_v5 = vadd.f32 %v685_v46, %v684_v36  ;;  %v701_v47 = vmul.f32 1.442695, %v699_v40 }
 0x139   :  { %v1875_v1 = vadd.f32 %v1197_v15, %v546_v51  ;;  %v1877_v7 = vadd.f32 %v1197_v15, %v616_v48  ;;  %v757_v9 = vadd.f32 %v756_v62, %v755_v39  ;;  %1521 = vpow2.f32 %v560_v49 }
 0x13a   :  { %v769_v50 = vmin.f32 %v1872_v41, 0.0  ;;  %v1879_v8 = vadd.f32 %v1204_v16, %v686_v5  ;;  %1523 = vpow2.f32 %v630_v52  ;;  %vm556_vm1 = vcmp.gt.f32.partialorder %v1863_v30, 0.0 }
 0x13b   :  { %v559_v10 = vmin.f32 %v1875_v1, 0.0  ;;  %v629_v12 = vmin.f32 %v1877_v7, 0.0  ;;  %1525 = vpow2.f32 %v701_v47  ;;  %v1884_v0 = vadd.f32 %v1204_v16, %v757_v9 }
 0x13c   :  { %v771_v6 = vmul.f32 1.442695, %v769_v50  ;;  %v700_v44 = vmin.f32 %v1879_v8, 0.0  ;;  %vm697_vm3 = vcmp.gt.f32.partialorder %v1867_v32, 0.0  ;;  %vm557_vm4 = vcmp.gt.f32.partialorder %v1875_v1, 0.0 }
 0x13d   :  { %v562_v13 = vmul.f32 1.442695, %v559_v10  ;;  %v632_v14 = vmul.f32 1.442695, %v629_v12  ;;  %v770_v2 = vmin.f32 %v1884_v0, 0.0  ;;  %vm627_vm5 = vcmp.gt.f32.partialorder %v1877_v7, 0.0 }
 0x13e   :  { %1527 = vpow2.f32 %v771_v6  ;;  %v703_v43 = vmul.f32 1.442695, %v700_v44  ;;  %vm698_vm6 = vcmp.gt.f32.partialorder %v1879_v8, 0.0  ;;  %vm768_vm7 = vcmp.gt.f32.partialorder %v1884_v0, 0.0 }
 0x13f   :  { %1529 = vpow2.f32 %v562_v13  ;;  %v773_v15 = vmul.f32 1.442695, %v770_v2  ;;  %vm626_vm8 = vcmp.gt.f32.partialorder %v1865_v31, 0.0  ;;  %vm767_vm9 = vcmp.gt.f32.partialorder %v1872_v41, 0.0 }
 0x140   :  { %1531 = vpow2.f32 %v632_v14 }
 0x141   :  { %1533 = vpow2.f32 %v703_v43 }
 0x142   :  { %1535 = vpow2.f32 %v773_v15 }
 0x145   :  { %v1887_v17 = vpop.f32.mrf.mxu0 }
 0x146   :  { %v1468_v18 = vpop.f32.mrf.mxu1  ;;  %v811_v16 = vmul.f32 %v1887_v17, %v1839_v55  ;;  %v1522_v27 = vpop.eup %1521 }
 0x147   :  { %v952_v19 = vmul.f32 %v1468_v18, %v1847_v60  ;;  %v1890_v20 = vpop.f32.mrf.mxu0  ;;  %v1524_v34 = vpop.eup %1523  ;;  %v1198_v49 = vadd.f32 -1.0, %v1522_v27 }
 0x148   :  { %v487_v21 = vpop.f32.mrf.mxu1  ;;  %v810_v22 = vmul.f32 %v1841_v56, %v1890_v20  ;;  %v1526_v55 = vpop.eup %1525  ;;  %v1201_v47 = vadd.f32 -1.0, %v1524_v34 }
 0x149   :  { %v951_v23 = vmul.f32 %v1849_v61, %v487_v21  ;;  %v1433_v25 = vpop.f32.mrf.mxu0  ;;  %v1205_v14 = vadd.f32 -1.0, %v1526_v55 }
 0x14a   :  { %v1471_v26 = vpop.f32.mrf.mxu1  ;;  %v814_v28 = vadd.f32 %v811_v16, %v810_v22  ;;  %v884_v33 = vmul.f32 %v1433_v25, %v1851_v3  ;;  %v813_v60 = vmul.f32 %v1433_v25, %v1835_v53 }
 0x14b   :  { %v955_v29 = vadd.f32 %v952_v19, %v951_v23  ;;  %v954_v35 = vmul.f32 %v1471_v26, %v1843_v57  ;;  %v395_v36 = vpop.f32.mrf.mxu0  ;;  %v1528_v40 = vpop.eup %1527  ;;  %v1926_v23 = vld [vmem:[%s1981_s3 + $0x2] ss:$0 sm:$0xff]  ;;  %v566_v26 = vsel %vm556_vm1, %v1863_v30, %v1198_v49 }
 0x14c   :  { %v497_v37 = vpop.f32.mrf.mxu1  ;;  %v815_v56 = vrot.slane %v814_v28, 4  ;;  %v812_v61 = vmul.f32 %v1837_v54, %v395_v36  ;;  %v883_v39 = vmul.f32 %v1853_v4, %v395_v36  ;;  %v1530_v57 = vpop.eup %1529  ;;  %v1209_v43 = vadd.f32 -1.0, %v1528_v40 }
 0x14d   :  { %v956_v38 = vrot.slane %v955_v29, 4  ;;  %v953_v53 = vmul.f32 %v1845_v59, %v497_v37  ;;  %v1532_v54 = vpop.eup %1531  ;;  %v1199_v50 = vadd.f32 -1.0, %v1530_v57 }
 0x14e   :  { %v816_v3 = vadd.f32 %v815_v56, %v814_v28  ;;  %v821_v45 = vadd.f32 %v813_v60, %v812_v61  ;;  %v1908_v46 = vadd.f32 %v884_v33, %v883_v39  ;;  %v1534_v51 = vpop.eup %1533  ;;  %v1202_v52 = vadd.f32 -1.0, %v1532_v54 }
 0x14f   :  { %v957_v42 = vadd.f32 %v956_v38, %v955_v29  ;;  %v962_v4 = vadd.f32 %v954_v35, %v953_v53  ;;  %v1914_v59 = vsel %vm557_vm4, %v1875_v1, %v1199_v50  ;;  %v1206_v9 = vadd.f32 -1.0, %v1534_v51  ;;  %v1536_v10 = vpop.eup %1535 }
 0x150   :  { %v817_v48 = vrot.slane %v816_v3, 2  ;;  %v822_v62 = vrot.slane %v821_v45, 4  ;;  %v637_v2 = vsel %vm627_vm5, %v1877_v7, %v1202_v52  ;;  %v1210_v15 = vadd.f32 -1.0, %v1536_v10  ;;  %v1220_v7 = vld [vmem:[%s1981_s3 + $0x3] ss:$0 sm:$0xff]  ;;  %s1719_s3 = smov [#allocation12]  }
 0x151   :  { %v958_v5 = vrot.slane %v957_v42, 2  ;;  %v963_v6 = vrot.slane %v962_v4, 4  ;;  %v570_v22 = vrot.slane %v1914_v59, 7  ;;  %v708_v27 = vsel %vm698_vm6, %v1879_v8, %v1206_v9  ;;  %s1182_s12 = sshll.u32 %s1719_s3, 4  ;;  %s1183_s12 = int_to_ptr.vmem [resolvable:$true] %s1182_s12 }
 0x152   :  { %v818_v12 = vadd.f32 %v817_v48, %v816_v3  ;;  %v823_v13 = vadd.f32 %v822_v62, %v821_v45  ;;  %v778_v1 = vsel %vm768_vm7, %v1884_v0, %v1210_v15  ;;  %v707_v33 = vsel %vm697_vm3, %v1867_v32, %v1205_v14  ;;  %s1657_s13 = scalar_lea.vmem %s1183_s12, 32  ;;  %p1662_p12 = scmp.lt.s32.totalorder %s1183_s12, %s1183_s12 }
 0x153   :  { %v959_v44 = vadd.f32 %v958_v5, %v957_v42  ;;  %v964_v18 = vadd.f32 %v963_v6, %v962_v4  ;;  %v640_v34 = vrot.slane %v637_v2, 7  ;;  %v572_v35 = vsel %vm571_vm2, %v570_v22, %v566_v26  ;;  %p1658_p11 = scmp.ne.s32.totalorder %s1183_s12, %s1657_s13  ;;  %p1663_p13 = scmp.lt.s32.totalorder %s1657_s13, %s1657_s13 }
 0x154   :  { %v819_v19 = vrot.slane %v818_v12, 1  ;;  %v824_v16 = vrot.slane %v823_v13, 2  ;;  %v711_v36 = vrot.slane %v708_v27, 7  ;;  %v781_v37 = vrot.slane %v778_v1, 7  ;;  %574 = vst [vmem:[#allocation11] sm:$0x3] %v572_v35 }
 0x155   :  { %v960_v21 = vrot.slane %v959_v44, 1  ;;  %v965_v25 = vrot.slane %v964_v18, 2  ;;  %v636_v32 = vsel %vm626_vm8, %v1865_v31, %v1201_v47  ;;  %v777_v53 = vsel %vm767_vm9, %v1872_v41, %v1209_v43  ;;  %p1664_p0 = por %p1663_p13, %p1662_p12 }
 0x156   :  { %v820_v28 = vadd.f32 %v819_v19, %v818_v12  ;;  %v825_v29 = vadd.f32 %v824_v16, %v823_v13  ;;  %v712_v38 = vsel %vm571_vm2, %v711_v36, %v707_v33  ;;  %v641_v3 = vsel %vm571_vm2, %v640_v34, %v636_v32  ;;  %v1095_v36 = vld [vmem:[#allocation10] sm:$0xff] }
 0x157   :  { %v961_v0 = vadd.f32 %v960_v21, %v959_v44  ;;  %v966_v60 = vadd.f32 %v965_v25, %v964_v18  ;;  %715 = vst [vmem:[#allocation11 + $0x4] sm:$0x3] %v712_v38  ;;  %644 = vst [vmem:[#allocation11 + $0x2] sm:$0x3] %v641_v3  ;;  %v782_v54 = vsel %vm571_vm2, %v781_v37, %v777_v53  ;;  %p1665_p1 = pnand %p1664_p0, %p1658_p11 }
 0x158   :  { %v836_v55 = vadd.f32 %v1926_v23, %v820_v28  ;;  %v826_v56 = vrot.slane %v825_v29, 1  ;;  %785 = vst [vmem:[#allocation11 + $0x6] sm:$0x3] %v782_v54  ;;  %v998_v10 = vadd.f32 %v707_v33, %v566_v26  ;;  %v999_v13 = vadd.f32 %v708_v27, %v1914_v59 }
 0x159   :  { %v977_v30 = vadd.f32 %v1220_v7, %v961_v0  ;;  %v967_v8 = vrot.slane %v966_v60, 1  ;;  %v1718_v26 = vmov 1966171168   ;;  %v862_v32 = vrot.slane %v1826_v24, %v1814_v11 }
 0x15a   :  { %v840_v61 = vmin.f32 %v836_v55, 0.0  ;;  %v827_v40 = vadd.f32 %v826_v56, %v825_v29  ;;  %vm838_vm10 = vcmp.gt.f32.partialorder %v836_v55, 0.0  ;;  %v1099_v27 = vunpack.c.l.s4 %v1718_v26 }
 0x15b   :  { %v981_v39 = vmin.f32 %v977_v30, 0.0  ;;  %v968_v57 = vadd.f32 %v967_v8, %v966_v60  ;;  %vm979_vm13 = vcmp.gt.f32.partialorder %v977_v30, 0.0 }
 0x15c   :  { %v842_v42 = vmul.f32 1.442695, %v840_v61  ;;  %v837_v45 = vadd.f32 %v1926_v23, %v827_v40  ;;  %v1100_v28 = vunpack.c.0.s8 %v1099_v27  ;;  %v893_v61 = vrot.slane %v1908_v46, 4 }
 0x15d   :  { %v983_v4 = vmul.f32 1.442695, %v981_v39  ;;  %v978_v49 = vadd.f32 %v1220_v7, %v968_v57 }
 0x15e   :  { %1537 = vpow2.f32 %v842_v42  ;;  %v841_v31 = vmin.f32 %v837_v45, 0.0  ;;  %vm839_vm11 = vcmp.gt.f32.partialorder %v837_v45, 0.0  ;;  %v1103_v0 = vsub.s32 %v1100_v28, %v1808_v63 }
 0x15f   :  { %v982_v50 = vmin.f32 %v978_v49, 0.0  ;;  %1539 = vpow2.f32 %v983_v4  ;;  %vm980_vm12 = vcmp.gt.f32.partialorder %v978_v49, 0.0  ;;  %v894_v39 = vadd.f32 %v893_v61, %v1908_v46 }
 0x160   :  { %v844_v51 = vmul.f32 1.442695, %v841_v31 }
 0x161   :  { %v985_v52 = vmul.f32 1.442695, %v982_v50  ;;  %v895_v40 = vrot.slane %v894_v39, 2 }
 0x162   :  { %1541 = vpow2.f32 %v844_v51 }
 0x163   :  { %1543 = vpow2.f32 %v985_v52  ;;  %v896_v53 = vadd.f32 %v895_v40, %v894_v39 }
 0x165   :  { %v897_v57 = vrot.slane %v896_v53, 1 }
 0x16b   :  { %v1538_v41 = vpop.eup %1537 }
 0x16c   :  { %v1213_v48 = vadd.f32 -1.0, %v1538_v41  ;;  %v1540_v5 = vpop.eup %1539 }
 0x16d   :  { %v1221_v12 = vadd.f32 -1.0, %v1540_v5 }
 0x16e   :  { %v848_v9 = vsel %vm838_vm10, %v836_v55, %v1213_v48 }
 0x16f   :  { %v1542_v62 = vpop.eup %1541  ;;  %v1000_v15 = vadd.f32 %v998_v10, %v848_v9  ;;  %v989_v16 = vsel %vm979_vm13, %v977_v30, %v1221_v12  ;;  %v1096_v30 = vld [vmem:[#allocation10 + $0x8] sm:$0xff] }
 0x170   :  { %v1544_v47 = vpop.eup %1543  ;;  %v1214_v6 = vadd.f32 -1.0, %v1542_v62 }
 0x171   :  { %v1222_v44 = vadd.f32 -1.0, %v1544_v47  ;;  %v1002_v7 = vadd.f32 %v1000_v15, %v989_v16 }
 0x172   :  { %v849_v14 = vsel %vm839_vm11, %v837_v45, %v1214_v6 }
 0x173   :  { %v852_v43 = vrot.slane %v849_v14, 7  ;;  %v990_v2 = vsel %vm980_vm12, %v978_v49, %v1222_v44  ;;  %v1001_v18 = vadd.f32 %v999_v13, %v849_v14  ;;  %v898_v49 = vadd.f32 %v897_v57, %v896_v53 }
 0x174   :  { %v993_v19 = vrot.slane %v990_v2, 7 }
 0x175   :  { %v853_v21 = vsel %vm571_vm2, %v852_v43, %v848_v9  ;;  %v1003_v22 = vadd.f32 %v1001_v18, %v990_v2  ;;  %v907_v46 = vadd.f32 %v1926_v23, %v898_v49  ;;  %v1151_v2 = vand.u32 127, %v507_v58 }
 0x176   :  { %856 = vst [vmem:[#allocation11 + $0x8] sm:$0x3] %v853_v21  ;;  %v994_v1 = vsel %vm571_vm2, %v993_v19, %v989_v16 }
 0x177   :  { %997 = vst [vmem:[#allocation11 + $0xc] sm:$0x3] %v994_v1  ;;  %v1022_v25 = vrot.slane %v1003_v22, 7  ;;  %v911_v48 = vmin.f32 %v907_v46, 0.0  ;;  %v1154_v18 = vsub.s32 %v1151_v2, %v1808_v63  ;;  %vm909_vm15 = vcmp.gt.f32.partialorder %v907_v46, 0.0 }
 0x179   :  { %v1023_v59 = vsel %vm571_vm2, %v1022_v25, %v1002_v7  ;;  %v914_v47 = vmul.f32 1.442695, %v911_v48 }
 0x17a   :  { %1505 = vmatmul.mubr.f32.vlgmr.msra.gmra.mxu0 %v1023_v59 }
 0x23a   :  { %v1091_v29 = vpop.f32.mrf.mxu0 }
 0x23b   :  { %v1104_v33 = vrot.slane %v1091_v29, %v1103_v0 }
 0x23c   :  { %v1506_v34 = vpop.f32.mrf.mxu0 }
 0x23d   :  { %v1105_v60 = vcombine.high %v1104_v33, %v1104_v33  ;;  %v1112_v35 = vrot.slane %v1104_v33, %v1103_v0 }
 0x23f   :  { %v1119_v37 = vrot.slane %v1105_v60, %v1103_v0  ;;  %v1123_v55 = vrot.slane %v1112_v35, %v1814_v11 }
 0x241   :  { %v1130_v56 = vmul.f32 %v1123_v55, %v1095_v36  ;;  %v1127_v8 = vrot.slane %v1119_v37, %v1814_v11 }
 0x243   :  { %1132 = vadd.xlane.f32.xlu0 %v1130_v56  ;;  %v1131_v38 = vmul.f32 %v1127_v8, %v1096_v30 }
 0x245   :  { %1134 = vadd.xlane.f32.xlu1 %v1131_v38 }
 0x256   :  { %868 = vbcast.lane.b32.xlu1 %v862_v32, 264 }
 0x259   :  { %864 = vbcast.lane.b32.xlu0 %v862_v32, 256 }
 0x2cc   :  { %v1133_v3 = vpop.xlane.xlu0 %1132 }
 0x2cd   :  { %v1136_v42 = vsub.f32 0.0, %v1133_v3 }
 0x2ce   :  { %v1135_v45 = vpop.xlane.xlu1 %1134 }
 0x2cf   :  { %v1138_v54 = vmul.f32 1.442695, %v1136_v42  ;;  %v1137_v4 = vsub.f32 0.0, %v1135_v45 }
 0x2d0   :  { %v865_v31 = vpop.permute.xlu0 %864 }
 0x2d1   :  { %1545 = vpow2.f32 %v1138_v54  ;;  %v1140_v50 = vmul.f32 1.442695, %v1137_v4  ;;  %v881_v11 = vmul.f32 %v865_v31, %v1890_v20 }
 0x2d2   :  { %v869_v51 = vpop.permute.xlu1 %868 }
 0x2d3   :  { %1547 = vpow2.f32 %v1140_v50  ;;  %v882_v24 = vmul.f32 %v1887_v17, %v869_v51 }
 0x2d4   :  { %1549 = vpow2.f32 %v914_v47 }
 0x2d5   :  { %v885_v52 = vadd.f32 %v882_v24, %v881_v11 }
 0x2d7   :  { %v886_v41 = vrot.slane %v885_v52, 4 }
 0x2d9   :  { %v887_v5 = vadd.f32 %v886_v41, %v885_v52 }
 0x2db   :  { %v888_v62 = vrot.slane %v887_v5, 2 }
 0x2dd   :  { %v889_v6 = vadd.f32 %v888_v62, %v887_v5 }
 0x2de   :  { %v1546_v9 = vpop.eup %1545 }
 0x2df   :  { %v1142_v10 = vadd.f32 1.0, %v1546_v9  ;;  %v890_v12 = vrot.slane %v889_v6, 1 }
 0x2e0   :  { %v1548_v44 = vpop.eup %1547 }
 0x2e1   :  { %1551 = vrcp.f32 %v1142_v10  ;;  %v1143_v13 = vadd.f32 1.0, %v1548_v44  ;;  %v891_v14 = vadd.f32 %v890_v12, %v889_v6  ;;  %v1550_v15 = vpop.eup %1549 }
 0x2e2   :  { %v1218_v16 = vadd.f32 -1.0, %v1550_v15 }
 0x2e3   :  { %1553 = vrcp.f32 %v1143_v13  ;;  %v906_v17 = vadd.f32 %v1926_v23, %v891_v14 }
 0x2e4   :  { %v919_v23 = vsel %vm909_vm15, %v907_v46, %v1218_v16 }
 0x2e5   :  { %v910_v20 = vmin.f32 %v906_v17, 0.0 }
 0x2e7   :  { %v912_v43 = vmul.f32 1.442695, %v910_v20 }
 0x2e9   :  { %1555 = vpow2.f32 %v912_v43 }
 0x2ee   :  { %v1552_v19 = vpop.eup %1551 }
 0x2ef   :  { %v1155_v22 = vrot.slane %v1552_v19, %v1154_v18 }
 0x2f0   :  { %v1554_v21 = vpop.eup %1553 }
 0x2f1   :  { %v1159_v1 = vrot.slane %v1554_v21, %v1154_v18 }
 0x2f3   :  { %v1160_v7 = vsel %vm571_vm2, %v1159_v1, %v1155_v22 }
 0x2f4   :  { %1163 = vst.msk [vmem:[#allocation12] sm:$0x3] %vm1162_vm14, %v1160_v7 }
 0x2f5   :  { %1668 = shalt.err (!%p1665_p1)
}
 0x2f6   :  { %1185 = dma.vmem_to_hbm [thread:$0]  %s1183_s12, 32, %s1985_s7, [#allocation13]   ;;  %v1556_v58 = vpop.eup %1555  ;;  %v922_v25 = vrot.slane %v919_v23, 7  ;;  %vm908_vm0 = vcmp.gt.f32.partialorder %v906_v17, 0.0 }
 0x2f7   :  { %s1720_s16 = smov [#allocation11]   ;;  %v1217_v63 = vadd.f32 -1.0, %v1556_v58 }
 0x2f8   :  { %s1169_s1 = sshll.u32 %s1720_s16, 4  ;;  %s1170_s1 = int_to_ptr.vmem [resolvable:$true] %s1169_s1 }
 0x2f9   :  { %v918_v59 = vsel %vm908_vm0, %v906_v17, %v1217_v63  ;;  %s1677_s17 = scalar_lea.vmem %s1170_s1, 224  ;;  %p1682_p3 = scmp.lt.s32.totalorder %s1170_s1, %s1170_s1 }
 0x2fa   :  { %v923_v26 = vsel %vm571_vm2, %v922_v25, %v918_v59  ;;  %p1678_p2 = scmp.ne.s32.totalorder %s1170_s1, %s1677_s17  ;;  %p1683_p4 = scmp.lt.s32.totalorder %s1677_s17, %s1677_s17 }
 0x2fb   :  { %926 = vst [vmem:[#allocation11 + $0xa] sm:$0x3] %v923_v26 }
 0x2fc   :  { %p1684_p5 = por %p1683_p4, %p1682_p3 }
 0x2fe   :  { %p1685_p6 = pnand %p1684_p5, %p1678_p2 }
 0x300   :  { %1688 = shalt.err (!%p1685_p6)
}
 0x301   :  { %1175 = dma.vmem_to_hbm [thread:$0]  %s1170_s1, 224, %s1984_s6, [#allocation4], %s1708_s27, %s1708_s27, %s1709_s28  }
 0x302   :  { %1703 = dma.done.wait [#allocation4], 224  }
 0x303   :  { %1704 = vsyncadd [#allocation4], 4294967072 }
 0x304   :  { %1705 = dma.done.wait [#allocation13], 32  }
 0x305   :  { %1706 = vsyncadd [#allocation13], 4294967264 }
 0x306   :  { %1192 = vsyncpa [#allocation3], 1 }
 0x307   :  { %1193 = vsyncpa [#allocation6], 1 }
 0x308   :  { %1194 = vsyncpa [#allocation9], 1 }
 0x309   :  { %1195 = vsyncpa [#allocation4], 1 }
 0x30a   :  { %1196 = vsyncpa [#allocation13], 1 }

</bundles_post_ra>
